<compile_context>
chip_gen: v5e
topology: v5e:2x2
jax: 0.10.0
libtpu: 0.0.40
codegen_flags: <defaults>
</compile_context>

<pallas_src>
import numpy as np
import jax
import jax.numpy as jnp
from jax.experimental import pallas as pl
from jax.experimental.pallas import tpu as pltpu  # noqa: F401  (TPU backend)

# ----------------------------- config (small) -------------------------------
B = 2            # batch
LT = 8           # text sequence length
LA = 8           # audio sequence length
TEXT_DIM = 48    # cfg.text_encoder_dim
AUDIO_DIM = 40   # cfg.audio_encoder_dim
FUSION_DIM = 32  # cfg.fusion_dim
NUM_HEADS = 4    # cfg.num_attention_head
HEAD_DIM = FUSION_DIM // NUM_HEADS
LINEAR_LAYER_OUTPUT = (32, 16)   # cfg.linear_layer_output
NUM_CLASSES = 4                  # cfg.num_classes
LN_EPS = 1e-5
LEAKY_SLOPE = 0.01


# ------------------------------ fused kernel --------------------------------
def make_fused_kernel(batch, lt, la, text_dim, audio_dim, num_heads, n_hidden):
    """Whole RAFM_SER head as one kernel (grid=(), everything in VMEM/vregs)."""
    D = FUSION_DIM
    hd = D // num_heads

    # Row offsets into the packed weight slab (all multiples of 8 for f32 ->
    # sublane-aligned slices, no relayout).
    r_wt = 0
    r_wq = r_wt + text_dim
    r_wa = r_wq + text_dim
    r_wk = r_wa + audio_dim
    r_wv = r_wk + audio_dim
    r_wo = r_wv + audio_dim
    r_head = r_wo + D

    # Row offsets into the packed vector slab.
    v_bt, v_ba, v_bq, v_bk, v_bv, v_bo, v_lng, v_lnb, v_agp, v_head = range(10)

    def kernel(text_ref, audio_ref, w_ref, vec_ref, out_ref):
        text = text_ref[...]     # (B*LT, text_dim)
        audio = audio_ref[...]   # (B*LA, audio_dim)

        bt = vec_ref[v_bt:v_bt + 1, :]
        ba = vec_ref[v_ba:v_ba + 1, :]
        bq = vec_ref[v_bq:v_bq + 1, :]
        bk = vec_ref[v_bk:v_bk + 1, :]
        bv = vec_ref[v_bv:v_bv + 1, :]
        bo = vec_ref[v_bo:v_bo + 1, :]
        ln_g = vec_ref[v_lng:v_lng + 1, :]
        ln_b = vec_ref[v_lnb:v_lnb + 1, :]
        agp_w = vec_ref[v_agp:v_agp + 1, :]

        # Projection family: 5 *independent* matmuls, all directly off the raw
        # encoder features (input projections folded into Wq/Wk/Wv at trace
        # time) -> they can issue back-to-back on the MXU.
        tp = jnp.dot(text, w_ref[r_wt:r_wt + text_dim, :],
                     preferred_element_type=jnp.float32) + bt          # (B*LT, D)
        q_all = jnp.dot(text, w_ref[r_wq:r_wq + text_dim, :],
                        preferred_element_type=jnp.float32) + bq       # (B*LT, D)
        ap = jnp.dot(audio, w_ref[r_wa:r_wa + audio_dim, :],
                     preferred_element_type=jnp.float32) + ba          # (B*LA, D)
        k_all = jnp.dot(audio, w_ref[r_wk:r_wk + audio_dim, :],
                        preferred_element_type=jnp.float32) + bk       # (B*LA, D)
        v_all = jnp.dot(audio, w_ref[r_wv:r_wv + audio_dim, :],
                        preferred_element_type=jnp.float32) + bv       # (B*LA, D)

        wo = w_ref[r_wo:r_wo + D, :]                                   # (D, D)

        def agp_pool(x):
            # AttentionGuidedPooling.  Logits on the VPU/XLU (broadcast-mul +
            # lane reduce) instead of an N=1 MXU matmul; the Linear bias is
            # constant over the sequence so it cancels in the softmax.
            logits = jnp.sum(x * agp_w, axis=-1, keepdims=True)       # (L, 1)
            e = jnp.exp(logits - jnp.max(logits, axis=0, keepdims=True))
            w = e / jnp.sum(e, axis=0, keepdims=True)                  # exact div
            return jnp.sum(w * x, axis=0, keepdims=True)               # (1, D)

        pooled_fused, pooled_text, pooled_audio = [], [], []
        for b in range(batch):                       # B=2, fully unrolled
            t = tp[b * lt:(b + 1) * lt, :]           # (LT, D)
            a = ap[b * la:(b + 1) * la, :]           # (LA, D)
            q = q_all[b * lt:(b + 1) * lt, :]
            k = k_all[b * la:(b + 1) * la, :]
            v = v_all[b * la:(b + 1) * la, :]

            # Residual + out_proj bias; per-head output projections accumulate
            # directly into x (no lane-concat of 8-wide head contexts).
            x = t + bo
            for h in range(num_heads):
                qh = q[:, h * hd:(h + 1) * hd]
                kh = k[:, h * hd:(h + 1) * hd]
                vh = v[:, h * hd:(h + 1) * hd]
                s = jax.lax.dot_general(qh, kh, (((1,), (1,)), ((), ())),
                                        preferred_element_type=jnp.float32)  # (LT, LA)
                e = jnp.exp(s - jnp.max(s, axis=-1, keepdims=True))
                p_attn = e / jnp.sum(e, axis=-1, keepdims=True)        # exact div
                ctx_h = jnp.dot(p_attn, vh,
                                preferred_element_type=jnp.float32)    # (LT, hd)
                # sublane-aligned 8-row slice of W_out; accumulate into x
                x = x + jnp.dot(ctx_h, wo[h * hd:(h + 1) * hd, :],
                                preferred_element_type=jnp.float32)

            # LayerNorm
            mu = jnp.mean(x, axis=-1, keepdims=True)
            var = jnp.mean((x - mu) ** 2, axis=-1, keepdims=True)
            fused_b = (x - mu) * jax.lax.rsqrt(var + LN_EPS) * ln_g + ln_b

            pooled_fused.append(agp_pool(fused_b))
            pooled_text.append(agp_pool(t))
            pooled_audio.append(agp_pool(a))

        # MLP head + classifier.  All layers zero-padded to (D, D) in the
        # wrapper so no in-kernel width slicing is needed.
        h_x = jnp.concatenate(pooled_fused, axis=0)                    # (B, D)
        for i in range(n_hidden + 1):
            w_i = w_ref[r_head + i * D:r_head + (i + 1) * D, :]
            b_i = vec_ref[v_head + i:v_head + i + 1, :]
            h_x = jnp.dot(h_x, w_i, preferred_element_type=jnp.float32) + b_i
            if i < n_hidden:
                h_x = jnp.where(h_x > 0, h_x, LEAKY_SLOPE * h_x)       # leaky_relu

        # Single packed output: one store, one writeback DMA.
        out_ref[...] = jnp.concatenate(
            [h_x,
             jnp.concatenate(pooled_text, axis=0),
             jnp.concatenate(pooled_audio, axis=0)], axis=0)           # (3B, D)

    return kernel


# ------------------------------ full forward --------------------------------
def _rafm_ser_forward(text_emb, audio_emb, p):
    D = FUSION_DIM
    Bn, Lt, Td = text_emb.shape
    _, La, Ad = audio_emb.shape
    n_hidden = len(LINEAR_LAYER_OUTPUT)

    # Flatten batch into the row (sublane) dimension for all dense projections.
    text_flat = text_emb.reshape(Bn * Lt, Td)
    audio_flat = audio_emb.reshape(Bn * La, Ad)

    # PyTorch MultiheadAttention packing: in_proj = [Wq; Wk; Wv].
    scale = 1.0 / float(HEAD_DIM) ** 0.5
    wq, wk, wv = p["in_proj_w"][:D], p["in_proj_w"][D:2 * D], p["in_proj_w"][2 * D:]
    bq, bk, bv = p["in_proj_b"][:D], p["in_proj_b"][D:2 * D], p["in_proj_b"][2 * D:]

    wt_t, bt = p["text_proj_w"].T, p["text_proj_b"]      # (Td, D), (D,)
    wa_t, ba = p["audio_proj_w"].T, p["audio_proj_b"]    # (Ad, D), (D,)
    wq_t = (wq * scale).T                                # 1/sqrt(hd) folded into Wq
    bq_s = bq * scale

    # Fold the text/audio input projections into Q/K/V (exact up to f32 reassoc):
    #   q = (x Wt + bt) Wq + bq  ==  x (Wt Wq) + (bt Wq + bq)
    wq_f, bq_f = wt_t @ wq_t, bt @ wq_t + bq_s           # (Td, D), (D,)
    wk_f, bk_f = wa_t @ wk.T, ba @ wk.T + bk             # (Ad, D), (D,)
    wv_f, bv_f = wa_t @ wv.T, ba @ wv.T + bv             # (Ad, D), (D,)

    # MLP head / classifier: zero-pad every layer to (D, D); leaky_relu(0)=0
    # keeps the padding lanes at exactly zero through the whole chain.
    def pad_dd(w_t, b):
        din, dout = w_t.shape
        wp = jnp.zeros((D, D), jnp.float32).at[:din, :dout].set(w_t)
        bp = jnp.zeros((D,), jnp.float32).at[:dout].set(b)
        return wp, bp

    head_w, head_b = [], []
    for i in range(n_hidden):
        wp, bp = pad_dd(p[f"lin{i}_w"].T, p[f"lin{i}_b"])
        head_w.append(wp); head_b.append(bp)
    wp, bp = pad_dd(p["cls_w"].T, p["cls_b"])
    head_w.append(wp); head_b.append(bp)

    # Pack operands: one (344, D) weight slab + one (12, D) vector slab
    # (cuts input DMA count from ~24 to 4 operands total).
    w_all = jnp.concatenate(
        [wt_t, wq_f, wa_t, wk_f, wv_f, p["out_proj_w"].T] + head_w, axis=0)
    vec_pack = jnp.stack(
        [bt, ba, bq_f, bk_f, bv_f, p["out_proj_b"], p["ln_g"], p["ln_b"],
         p["agp_w"][0]] + head_b, axis=0)
    # (the AGP Linear bias is constant over the sequence -> cancels in softmax)

    kernel = make_fused_kernel(Bn, Lt, La, Td, Ad, NUM_HEADS, n_hidden)

    out_packed = pl.pallas_call(
        kernel,
        out_shape=jax.ShapeDtypeStruct((3 * Bn, D), jnp.float32),
        # grid=() : single invocation, single core — total footprint << VMEM.
    )(text_flat, audio_flat, w_all, vec_pack)

    out = out_packed[:Bn, :NUM_CLASSES]
    pooled_text = out_packed[Bn:2 * Bn, :]
    pooled_audio = out_packed[2 * Bn:, :]
    return out, pooled_text, pooled_audio


rafm_ser_pallas = jax.jit(_rafm_ser_forward)


# ----------------------------- pure-JAX reference ----------------------------
def ref_forward(text_emb, audio_emb, p):
    D, H, hd = FUSION_DIM, NUM_HEADS, HEAD_DIM
    tp = text_emb @ p["text_proj_w"].T + p["text_proj_b"]
    ap = audio_emb @ p["audio_proj_w"].T + p["audio_proj_b"]
    wq, wk, wv = p["in_proj_w"][:D], p["in_proj_w"][D:2 * D], p["in_proj_w"][2 * D:]
    bq, bk, bv = p["in_proj_b"][:D], p["in_proj_b"][D:2 * D], p["in_proj_b"][2 * D:]
    q = tp @ wq.T + bq
    k = ap @ wk.T + bk
    v = ap @ wv.T + bv
    Bn, Lt, _ = tp.shape
    La = ap.shape[1]
    q = q.reshape(Bn, Lt, H, hd).transpose(0, 2, 1, 3)
    k = k.reshape(Bn, La, H, hd).transpose(0, 2, 1, 3)
    v = v.reshape(Bn, La, H, hd).transpose(0, 2, 1, 3)
    s = jnp.einsum("bhqd,bhkd->bhqk", q, k) / jnp.sqrt(float(hd))
    pr = jax.nn.softmax(s, axis=-1)
    ctx = jnp.einsum("bhqk,bhkd->bhqd", pr, v).transpose(0, 2, 1, 3).reshape(Bn, Lt, D)
    attn_out = ctx @ p["out_proj_w"].T + p["out_proj_b"]
    x = tp + attn_out
    mu = x.mean(-1, keepdims=True)
    var = ((x - mu) ** 2).mean(-1, keepdims=True)
    fused = (x - mu) / jnp.sqrt(var + LN_EPS) * p["ln_g"] + p["ln_b"]

    def agp_ref(y):
        logits = y @ p["agp_w"].T + p["agp_b"]
        w = jax.nn.softmax(logits, axis=1)
        return jnp.sum(w * y, axis=1)

    h = agp_ref(fused)
    for i in range(len(LINEAR_LAYER_OUTPUT)):
        h = h @ p[f"lin{i}_w"].T + p[f"lin{i}_b"]
        h = jnp.where(h > 0, h, LEAKY_SLOPE * h)
    out = h @ p["cls_w"].T + p["cls_b"]
    return out, agp_ref(tp), agp_ref(ap)


# ------------------------------- param init ---------------------------------
def init_params(key):
    ks = jax.random.split(key, 18)
    w = lambda k, shape: 0.05 * jax.random.normal(k, shape, jnp.float32)
    p = {
        "text_proj_w": w(ks[0], (FUSION_DIM, TEXT_DIM)),
        "text_proj_b": w(ks[1], (FUSION_DIM,)),
        "audio_proj_w": w(ks[2], (FUSION_DIM, AUDIO_DIM)),
        "audio_proj_b": w(ks[3], (FUSION_DIM,)),
        "in_proj_w": w(ks[4], (3 * FUSION_DIM, FUSION_DIM)),
        "in_proj_b": w(ks[5], (3 * FUSION_DIM,)),
        "out_proj_w": w(ks[6], (FUSION_DIM, FUSION_DIM)),
        "out_proj_b": w(ks[7], (FUSION_DIM,)),
        "ln_g": jnp.ones((FUSION_DIM,), jnp.float32),
        "ln_b": jnp.zeros((FUSION_DIM,), jnp.float32),
        "agp_w": w(ks[8], (1, FUSION_DIM)),
        "agp_b": w(ks[9], (1,)),
    }
    dims = (FUSION_DIM,) + LINEAR_LAYER_OUTPUT
    for i, (din, dout) in enumerate(zip(dims[:-1], dims[1:])):
        p[f"lin{i}_w"] = w(ks[10 + 2 * i], (dout, din))
        p[f"lin{i}_b"] = w(ks[11 + 2 * i], (dout,))
    p["cls_w"] = w(ks[16], (NUM_CLASSES, dims[-1]))
    p["cls_b"] = w(ks[17], (NUM_CLASSES,))
    return p


# ---------------------------------- main -------------------------------------
if __name__ == "__main__":
    key = jax.random.PRNGKey(0)
    k_text, k_audio = jax.random.split(key)
    text_emb = jax.random.normal(k_text, (B, LT, TEXT_DIM), jnp.float32)
    audio_emb = jax.random.normal(k_audio, (B, LA, AUDIO_DIM), jnp.float32)
    params = init_params(jax.random.PRNGKey(42))

    out, pooled_text, pooled_audio = rafm_ser_pallas(text_emb, audio_emb, params)
    jax.block_until_ready((out, pooled_text, pooled_audio))

    ref_out, ref_pt, ref_pa = ref_forward(text_emb, audio_emb, params)
    # Exact softmax division in-kernel; remaining delta is f32 reassociation
    # from the trace-time weight folding -> tight tolerance.
    np.testing.assert_allclose(np.asarray(out), np.asarray(ref_out), atol=1e-3, rtol=1e-3)
    np.testing.assert_allclose(np.asarray(pooled_text), np.asarray(ref_pt), atol=1e-3, rtol=1e-3)
    np.testing.assert_allclose(np.asarray(pooled_audio), np.asarray(ref_pa), atol=1e-3, rtol=1e-3)

    print("KERNEL_OK")
</pallas_src>

<mosaic_0001>
module attributes {stable_mosaic.version = 11 : i64} {
  func.func @kernel(%arg0: memref<16x48xf32, #tpu.memory_space<vmem>>, %arg1: memref<16x40xf32, #tpu.memory_space<vmem>>, %arg2: memref<344x32xf32, #tpu.memory_space<vmem>>, %arg3: memref<12x32xf32, #tpu.memory_space<vmem>>, %arg4: memref<6x32xf32, #tpu.memory_space<vmem>>) attributes {dimension_semantics = [], scalar_prefetch = 0 : i64, scratch_operands = 0 : i64, tpu.core_type = #tpu.core_type<tc>} {
    %c0 = arith.constant 0 : index
    %c0_0 = arith.constant 0 : index
    %0 = vector.load %arg0[%c0, %c0_0] : memref<16x48xf32, #tpu.memory_space<vmem>>, vector<16x48xf32>
    %c0_1 = arith.constant 0 : index
    %c0_2 = arith.constant 0 : index
    %1 = vector.load %arg1[%c0_1, %c0_2] : memref<16x40xf32, #tpu.memory_space<vmem>>, vector<16x40xf32>
    %c0_3 = arith.constant 0 : index
    %c0_4 = arith.constant 0 : index
    %2 = vector.load %arg3[%c0_3, %c0_4] : memref<12x32xf32, #tpu.memory_space<vmem>>, vector<1x32xf32>
    %c1 = arith.constant 1 : index
    %c0_5 = arith.constant 0 : index
    %3 = vector.load %arg3[%c1, %c0_5] : memref<12x32xf32, #tpu.memory_space<vmem>>, vector<1x32xf32>
    %c2 = arith.constant 2 : index
    %c0_6 = arith.constant 0 : index
    %4 = vector.load %arg3[%c2, %c0_6] : memref<12x32xf32, #tpu.memory_space<vmem>>, vector<1x32xf32>
    %c3 = arith.constant 3 : index
    %c0_7 = arith.constant 0 : index
    %5 = vector.load %arg3[%c3, %c0_7] : memref<12x32xf32, #tpu.memory_space<vmem>>, vector<1x32xf32>
    %c4 = arith.constant 4 : index
    %c0_8 = arith.constant 0 : index
    %6 = vector.load %arg3[%c4, %c0_8] : memref<12x32xf32, #tpu.memory_space<vmem>>, vector<1x32xf32>
    %c5 = arith.constant 5 : index
    %c0_9 = arith.constant 0 : index
    %7 = vector.load %arg3[%c5, %c0_9] : memref<12x32xf32, #tpu.memory_space<vmem>>, vector<1x32xf32>
    %c6 = arith.constant 6 : index
    %c0_10 = arith.constant 0 : index
    %8 = vector.load %arg3[%c6, %c0_10] : memref<12x32xf32, #tpu.memory_space<vmem>>, vector<1x32xf32>
    %c7 = arith.constant 7 : index
    %c0_11 = arith.constant 0 : index
    %9 = vector.load %arg3[%c7, %c0_11] : memref<12x32xf32, #tpu.memory_space<vmem>>, vector<1x32xf32>
    %c8 = arith.constant 8 : index
    %c0_12 = arith.constant 0 : index
    %10 = vector.load %arg3[%c8, %c0_12] : memref<12x32xf32, #tpu.memory_space<vmem>>, vector<1x32xf32>
    %c0_13 = arith.constant 0 : index
    %c0_14 = arith.constant 0 : index
    %11 = vector.load %arg2[%c0_13, %c0_14] : memref<344x32xf32, #tpu.memory_space<vmem>>, vector<48x32xf32>
    %cst = arith.constant dense<0.000000e+00> : vector<16x32xf32>
    %12 = tpu.matmul %0, %11, %cst {dimension_numbers = #tpu.dot_dimension_numbers<[1], [0], [0], [1], [0, 0, 1, 1], [], []>} : vector<16x48xf32>, vector<48x32xf32>, vector<16x32xf32> -> vector<16x32xf32>
    %13 = vector.broadcast %2 : vector<1x32xf32> to vector<16x32xf32>
    %14 = arith.addf %12, %13 : vector<16x32xf32>
    %c48 = arith.constant 48 : index
    %c0_15 = arith.constant 0 : index
    %15 = vector.load %arg2[%c48, %c0_15] : memref<344x32xf32, #tpu.memory_space<vmem>>, vector<48x32xf32>
    %cst_16 = arith.constant dense<0.000000e+00> : vector<16x32xf32>
    %16 = tpu.matmul %0, %15, %cst_16 {dimension_numbers = #tpu.dot_dimension_numbers<[1], [0], [0], [1], [0, 0, 1, 1], [], []>} : vector<16x48xf32>, vector<48x32xf32>, vector<16x32xf32> -> vector<16x32xf32>
    %17 = vector.broadcast %4 : vector<1x32xf32> to vector<16x32xf32>
    %18 = arith.addf %16, %17 : vector<16x32xf32>
    %c96 = arith.constant 96 : index
    %c0_17 = arith.constant 0 : index
    %19 = vector.load %arg2[%c96, %c0_17] : memref<344x32xf32, #tpu.memory_space<vmem>>, vector<40x32xf32>
    %cst_18 = arith.constant dense<0.000000e+00> : vector<16x32xf32>
    %20 = tpu.matmul %1, %19, %cst_18 {dimension_numbers = #tpu.dot_dimension_numbers<[1], [0], [0], [1], [0, 0, 1, 1], [], []>} : vector<16x40xf32>, vector<40x32xf32>, vector<16x32xf32> -> vector<16x32xf32>
    %21 = vector.broadcast %3 : vector<1x32xf32> to vector<16x32xf32>
    %22 = arith.addf %20, %21 : vector<16x32xf32>
    %c136 = arith.constant 136 : index
    %c0_19 = arith.constant 0 : index
    %23 = vector.load %arg2[%c136, %c0_19] : memref<344x32xf32, #tpu.memory_space<vmem>>, vector<40x32xf32>
    %cst_20 = arith.constant dense<0.000000e+00> : vector<16x32xf32>
    %24 = tpu.matmul %1, %23, %cst_20 {dimension_numbers = #tpu.dot_dimension_numbers<[1], [0], [0], [1], [0, 0, 1, 1], [], []>} : vector<16x40xf32>, vector<40x32xf32>, vector<16x32xf32> -> vector<16x32xf32>
    %25 = vector.broadcast %5 : vector<1x32xf32> to vector<16x32xf32>
    %26 = arith.addf %24, %25 : vector<16x32xf32>
    %c176 = arith.constant 176 : index
    %c0_21 = arith.constant 0 : index
    %27 = vector.load %arg2[%c176, %c0_21] : memref<344x32xf32, #tpu.memory_space<vmem>>, vector<40x32xf32>
    %cst_22 = arith.constant dense<0.000000e+00> : vector<16x32xf32>
    %28 = tpu.matmul %1, %27, %cst_22 {dimension_numbers = #tpu.dot_dimension_numbers<[1], [0], [0], [1], [0, 0, 1, 1], [], []>} : vector<16x40xf32>, vector<40x32xf32>, vector<16x32xf32> -> vector<16x32xf32>
    %29 = vector.broadcast %6 : vector<1x32xf32> to vector<16x32xf32>
    %30 = arith.addf %28, %29 : vector<16x32xf32>
    %c216 = arith.constant 216 : index
    %c0_23 = arith.constant 0 : index
    %31 = vector.load %arg2[%c216, %c0_23] : memref<344x32xf32, #tpu.memory_space<vmem>>, vector<32x32xf32>
    %32 = vector.extract_strided_slice %14 {offsets = [0, 0], sizes = [8, 32], strides = [1, 1]} : vector<16x32xf32> to vector<8x32xf32>
    %33 = vector.extract_strided_slice %22 {offsets = [0, 0], sizes = [8, 32], strides = [1, 1]} : vector<16x32xf32> to vector<8x32xf32>
    %34 = vector.extract_strided_slice %18 {offsets = [0, 0], sizes = [8, 32], strides = [1, 1]} : vector<16x32xf32> to vector<8x32xf32>
    %35 = vector.extract_strided_slice %26 {offsets = [0, 0], sizes = [8, 32], strides = [1, 1]} : vector<16x32xf32> to vector<8x32xf32>
    %36 = vector.extract_strided_slice %30 {offsets = [0, 0], sizes = [8, 32], strides = [1, 1]} : vector<16x32xf32> to vector<8x32xf32>
    %37 = vector.broadcast %7 : vector<1x32xf32> to vector<8x32xf32>
    %38 = arith.addf %32, %37 : vector<8x32xf32>
    %39 = vector.extract_strided_slice %34 {offsets = [0, 0], sizes = [8, 8], strides = [1, 1]} : vector<8x32xf32> to vector<8x8xf32>
    %40 = vector.extract_strided_slice %35 {offsets = [0, 0], sizes = [8, 8], strides = [1, 1]} : vector<8x32xf32> to vector<8x8xf32>
    %41 = vector.extract_strided_slice %36 {offsets = [0, 0], sizes = [8, 8], strides = [1, 1]} : vector<8x32xf32> to vector<8x8xf32>
    %cst_24 = arith.constant dense<0.000000e+00> : vector<8x8xf32>
    %42 = tpu.matmul %39, %40, %cst_24 {dimension_numbers = #tpu.dot_dimension_numbers<[1], [1], [0], [0], [0, 0, 1, 0], [], []>} : vector<8x8xf32>, vector<8x8xf32>, vector<8x8xf32> -> vector<8x8xf32>
    %cst_25 = arith.constant dense<0xFF800000> : vector<8xf32>
    %43 = vector.multi_reduction <maximumf>, %42, %cst_25 [1] : vector<8x8xf32> to vector<8xf32>
    %44 = vector.shape_cast %43 : vector<8xf32> to vector<8x1xf32>
    %45 = vector.broadcast %44 : vector<8x1xf32> to vector<8x8xf32>
    %46 = arith.subf %42, %45 : vector<8x8xf32>
    %47 = math.exp %46 : vector<8x8xf32>
    %cst_26 = arith.constant dense<0.000000e+00> : vector<8xf32>
    %48 = vector.multi_reduction <add>, %47, %cst_26 [1] : vector<8x8xf32> to vector<8xf32>
    %49 = vector.shape_cast %48 : vector<8xf32> to vector<8x1xf32>
    %50 = vector.broadcast %49 : vector<8x1xf32> to vector<8x8xf32>
    %51 = arith.divf %47, %50 : vector<8x8xf32>
    %cst_27 = arith.constant dense<0.000000e+00> : vector<8x8xf32>
    %52 = tpu.matmul %51, %41, %cst_27 {dimension_numbers = #tpu.dot_dimension_numbers<[1], [0], [0], [1], [0, 0, 1, 1], [], []>} : vector<8x8xf32>, vector<8x8xf32>, vector<8x8xf32> -> vector<8x8xf32>
    %53 = vector.extract_strided_slice %31 {offsets = [0, 0], sizes = [8, 32], strides = [1, 1]} : vector<32x32xf32> to vector<8x32xf32>
    %cst_28 = arith.constant dense<0.000000e+00> : vector<8x32xf32>
    %54 = tpu.matmul %52, %53, %cst_28 {dimension_numbers = #tpu.dot_dimension_numbers<[1], [0], [0], [1], [0, 0, 1, 1], [], []>} : vector<8x8xf32>, vector<8x32xf32>, vector<8x32xf32> -> vector<8x32xf32>
    %55 = arith.addf %38, %54 : vector<8x32xf32>
    %56 = vector.extract_strided_slice %34 {offsets = [0, 8], sizes = [8, 8], strides = [1, 1]} : vector<8x32xf32> to vector<8x8xf32>
    %57 = vector.extract_strided_slice %35 {offsets = [0, 8], sizes = [8, 8], strides = [1, 1]} : vector<8x32xf32> to vector<8x8xf32>
    %58 = vector.extract_strided_slice %36 {offsets = [0, 8], sizes = [8, 8], strides = [1, 1]} : vector<8x32xf32> to vector<8x8xf32>
    %cst_29 = arith.constant dense<0.000000e+00> : vector<8x8xf32>
    %59 = tpu.matmul %56, %57, %cst_29 {dimension_numbers = #tpu.dot_dimension_numbers<[1], [1], [0], [0], [0, 0, 1, 0], [], []>} : vector<8x8xf32>, vector<8x8xf32>, vector<8x8xf32> -> vector<8x8xf32>
    %cst_30 = arith.constant dense<0xFF800000> : vector<8xf32>
    %60 = vector.multi_reduction <maximumf>, %59, %cst_30 [1] : vector<8x8xf32> to vector<8xf32>
    %61 = vector.shape_cast %60 : vector<8xf32> to vector<8x1xf32>
    %62 = vector.broadcast %61 : vector<8x1xf32> to vector<8x8xf32>
    %63 = arith.subf %59, %62 : vector<8x8xf32>
    %64 = math.exp %63 : vector<8x8xf32>
    %cst_31 = arith.constant dense<0.000000e+00> : vector<8xf32>
    %65 = vector.multi_reduction <add>, %64, %cst_31 [1] : vector<8x8xf32> to vector<8xf32>
    %66 = vector.shape_cast %65 : vector<8xf32> to vector<8x1xf32>
    %67 = vector.broadcast %66 : vector<8x1xf32> to vector<8x8xf32>
    %68 = arith.divf %64, %67 : vector<8x8xf32>
    %cst_32 = arith.constant dense<0.000000e+00> : vector<8x8xf32>
    %69 = tpu.matmul %68, %58, %cst_32 {dimension_numbers = #tpu.dot_dimension_numbers<[1], [0], [0], [1], [0, 0, 1, 1], [], []>} : vector<8x8xf32>, vector<8x8xf32>, vector<8x8xf32> -> vector<8x8xf32>
    %70 = vector.extract_strided_slice %31 {offsets = [8, 0], sizes = [8, 32], strides = [1, 1]} : vector<32x32xf32> to vector<8x32xf32>
    %cst_33 = arith.constant dense<0.000000e+00> : vector<8x32xf32>
    %71 = tpu.matmul %69, %70, %cst_33 {dimension_numbers = #tpu.dot_dimension_numbers<[1], [0], [0], [1], [0, 0, 1, 1], [], []>} : vector<8x8xf32>, vector<8x32xf32>, vector<8x32xf32> -> vector<8x32xf32>
    %72 = arith.addf %55, %71 : vector<8x32xf32>
    %73 = vector.extract_strided_slice %34 {offsets = [0, 16], sizes = [8, 8], strides = [1, 1]} : vector<8x32xf32> to vector<8x8xf32>
    %74 = vector.extract_strided_slice %35 {offsets = [0, 16], sizes = [8, 8], strides = [1, 1]} : vector<8x32xf32> to vector<8x8xf32>
    %75 = vector.extract_strided_slice %36 {offsets = [0, 16], sizes = [8, 8], strides = [1, 1]} : vector<8x32xf32> to vector<8x8xf32>
    %cst_34 = arith.constant dense<0.000000e+00> : vector<8x8xf32>
    %76 = tpu.matmul %73, %74, %cst_34 {dimension_numbers = #tpu.dot_dimension_numbers<[1], [1], [0], [0], [0, 0, 1, 0], [], []>} : vector<8x8xf32>, vector<8x8xf32>, vector<8x8xf32> -> vector<8x8xf32>
    %cst_35 = arith.constant dense<0xFF800000> : vector<8xf32>
    %77 = vector.multi_reduction <maximumf>, %76, %cst_35 [1] : vector<8x8xf32> to vector<8xf32>
    %78 = vector.shape_cast %77 : vector<8xf32> to vector<8x1xf32>
    %79 = vector.broadcast %78 : vector<8x1xf32> to vector<8x8xf32>
    %80 = arith.subf %76, %79 : vector<8x8xf32>
    %81 = math.exp %80 : vector<8x8xf32>
    %cst_36 = arith.constant dense<0.000000e+00> : vector<8xf32>
    %82 = vector.multi_reduction <add>, %81, %cst_36 [1] : vector<8x8xf32> to vector<8xf32>
    %83 = vector.shape_cast %82 : vector<8xf32> to vector<8x1xf32>
    %84 = vector.broadcast %83 : vector<8x1xf32> to vector<8x8xf32>
    %85 = arith.divf %81, %84 : vector<8x8xf32>
    %cst_37 = arith.constant dense<0.000000e+00> : vector<8x8xf32>
    %86 = tpu.matmul %85, %75, %cst_37 {dimension_numbers = #tpu.dot_dimension_numbers<[1], [0], [0], [1], [0, 0, 1, 1], [], []>} : vector<8x8xf32>, vector<8x8xf32>, vector<8x8xf32> -> vector<8x8xf32>
    %87 = vector.extract_strided_slice %31 {offsets = [16, 0], sizes = [8, 32], strides = [1, 1]} : vector<32x32xf32> to vector<8x32xf32>
    %cst_38 = arith.constant dense<0.000000e+00> : vector<8x32xf32>
    %88 = tpu.matmul %86, %87, %cst_38 {dimension_numbers = #tpu.dot_dimension_numbers<[1], [0], [0], [1], [0, 0, 1, 1], [], []>} : vector<8x8xf32>, vector<8x32xf32>, vector<8x32xf32> -> vector<8x32xf32>
    %89 = arith.addf %72, %88 : vector<8x32xf32>
    %90 = vector.extract_strided_slice %34 {offsets = [0, 24], sizes = [8, 8], strides = [1, 1]} : vector<8x32xf32> to vector<8x8xf32>
    %91 = vector.extract_strided_slice %35 {offsets = [0, 24], sizes = [8, 8], strides = [1, 1]} : vector<8x32xf32> to vector<8x8xf32>
    %92 = vector.extract_strided_slice %36 {offsets = [0, 24], sizes = [8, 8], strides = [1, 1]} : vector<8x32xf32> to vector<8x8xf32>
    %cst_39 = arith.constant dense<0.000000e+00> : vector<8x8xf32>
    %93 = tpu.matmul %90, %91, %cst_39 {dimension_numbers = #tpu.dot_dimension_numbers<[1], [1], [0], [0], [0, 0, 1, 0], [], []>} : vector<8x8xf32>, vector<8x8xf32>, vector<8x8xf32> -> vector<8x8xf32>
    %cst_40 = arith.constant dense<0xFF800000> : vector<8xf32>
    %94 = vector.multi_reduction <maximumf>, %93, %cst_40 [1] : vector<8x8xf32> to vector<8xf32>
    %95 = vector.shape_cast %94 : vector<8xf32> to vector<8x1xf32>
    %96 = vector.broadcast %95 : vector<8x1xf32> to vector<8x8xf32>
    %97 = arith.subf %93, %96 : vector<8x8xf32>
    %98 = math.exp %97 : vector<8x8xf32>
    %cst_41 = arith.constant dense<0.000000e+00> : vector<8xf32>
    %99 = vector.multi_reduction <add>, %98, %cst_41 [1] : vector<8x8xf32> to vector<8xf32>
    %100 = vector.shape_cast %99 : vector<8xf32> to vector<8x1xf32>
    %101 = vector.broadcast %100 : vector<8x1xf32> to vector<8x8xf32>
    %102 = arith.divf %98, %101 : vector<8x8xf32>
    %cst_42 = arith.constant dense<0.000000e+00> : vector<8x8xf32>
    %103 = tpu.matmul %102, %92, %cst_42 {dimension_numbers = #tpu.dot_dimension_numbers<[1], [0], [0], [1], [0, 0, 1, 1], [], []>} : vector<8x8xf32>, vector<8x8xf32>, vector<8x8xf32> -> vector<8x8xf32>
    %104 = vector.extract_strided_slice %31 {offsets = [24, 0], sizes = [8, 32], strides = [1, 1]} : vector<32x32xf32> to vector<8x32xf32>
    %cst_43 = arith.constant dense<0.000000e+00> : vector<8x32xf32>
    %105 = tpu.matmul %103, %104, %cst_43 {dimension_numbers = #tpu.dot_dimension_numbers<[1], [0], [0], [1], [0, 0, 1, 1], [], []>} : vector<8x8xf32>, vector<8x32xf32>, vector<8x32xf32> -> vector<8x32xf32>
    %106 = arith.addf %89, %105 : vector<8x32xf32>
    %cst_44 = arith.constant dense<0.000000e+00> : vector<8xf32>
    %107 = vector.multi_reduction <add>, %106, %cst_44 [1] : vector<8x32xf32> to vector<8xf32>
    %108 = vector.shape_cast %107 : vector<8xf32> to vector<8x1xf32>
    %cst_45 = arith.constant 3.200000e+01 : f32
    %109 = vector.broadcast %cst_45 : f32 to vector<8x1xf32>
    %110 = arith.divf %108, %109 : vector<8x1xf32>
    %111 = vector.broadcast %110 : vector<8x1xf32> to vector<8x32xf32>
    %112 = arith.subf %106, %111 : vector<8x32xf32>
    %113 = arith.mulf %112, %112 : vector<8x32xf32>
    %cst_46 = arith.constant dense<0.000000e+00> : vector<8xf32>
    %114 = vector.multi_reduction <add>, %113, %cst_46 [1] : vector<8x32xf32> to vector<8xf32>
    %115 = vector.shape_cast %114 : vector<8xf32> to vector<8x1xf32>
    %cst_47 = arith.constant 3.200000e+01 : f32
    %116 = vector.broadcast %cst_47 : f32 to vector<8x1xf32>
    %117 = arith.divf %115, %116 : vector<8x1xf32>
    %118 = vector.broadcast %110 : vector<8x1xf32> to vector<8x32xf32>
    %119 = arith.subf %106, %118 : vector<8x32xf32>
    %cst_48 = arith.constant 9.99999974E-6 : f32
    %120 = vector.broadcast %cst_48 : f32 to vector<8x1xf32>
    %121 = arith.addf %117, %120 : vector<8x1xf32>
    %122 = math.rsqrt %121 : vector<8x1xf32>
    %123 = vector.broadcast %122 : vector<8x1xf32> to vector<8x32xf32>
    %124 = arith.mulf %119, %123 : vector<8x32xf32>
    %125 = vector.broadcast %8 : vector<1x32xf32> to vector<8x32xf32>
    %126 = arith.mulf %124, %125 : vector<8x32xf32>
    %127 = vector.broadcast %9 : vector<1x32xf32> to vector<8x32xf32>
    %128 = arith.addf %126, %127 : vector<8x32xf32>
    %129 = vector.broadcast %10 : vector<1x32xf32> to vector<8x32xf32>
    %130 = arith.mulf %128, %129 : vector<8x32xf32>
    %cst_49 = arith.constant dense<0.000000e+00> : vector<8xf32>
    %131 = vector.multi_reduction <add>, %130, %cst_49 [1] : vector<8x32xf32> to vector<8xf32>
    %132 = vector.shape_cast %131 : vector<8xf32> to vector<8x1xf32>
    %cst_50 = arith.constant dense<0xFF800000> : vector<1xf32>
    %133 = vector.multi_reduction <maximumf>, %132, %cst_50 [0] : vector<8x1xf32> to vector<1xf32>
    %134 = vector.shape_cast %133 : vector<1xf32> to vector<1x1xf32>
    %135 = vector.broadcast %134 : vector<1x1xf32> to vector<8x1xf32>
    %136 = arith.subf %132, %135 : vector<8x1xf32>
    %137 = math.exp %136 : vector<8x1xf32>
    %cst_51 = arith.constant dense<0.000000e+00> : vector<1xf32>
    %138 = vector.multi_reduction <add>, %137, %cst_51 [0] : vector<8x1xf32> to vector<1xf32>
    %139 = vector.shape_cast %138 : vector<1xf32> to vector<1x1xf32>
    %140 = vector.broadcast %139 : vector<1x1xf32> to vector<8x1xf32>
    %141 = arith.divf %137, %140 : vector<8x1xf32>
    %142 = vector.broadcast %141 : vector<8x1xf32> to vector<8x32xf32>
    %143 = arith.mulf %142, %128 : vector<8x32xf32>
    %cst_52 = arith.constant dense<0.000000e+00> : vector<32xf32>
    %144 = vector.multi_reduction <add>, %143, %cst_52 [0] : vector<8x32xf32> to vector<32xf32>
    %145 = vector.shape_cast %144 : vector<32xf32> to vector<1x32xf32>
    %146 = vector.broadcast %10 : vector<1x32xf32> to vector<8x32xf32>
    %147 = arith.mulf %32, %146 : vector<8x32xf32>
    %cst_53 = arith.constant dense<0.000000e+00> : vector<8xf32>
    %148 = vector.multi_reduction <add>, %147, %cst_53 [1] : vector<8x32xf32> to vector<8xf32>
    %149 = vector.shape_cast %148 : vector<8xf32> to vector<8x1xf32>
    %cst_54 = arith.constant dense<0xFF800000> : vector<1xf32>
    %150 = vector.multi_reduction <maximumf>, %149, %cst_54 [0] : vector<8x1xf32> to vector<1xf32>
    %151 = vector.shape_cast %150 : vector<1xf32> to vector<1x1xf32>
    %152 = vector.broadcast %151 : vector<1x1xf32> to vector<8x1xf32>
    %153 = arith.subf %149, %152 : vector<8x1xf32>
    %154 = math.exp %153 : vector<8x1xf32>
    %cst_55 = arith.constant dense<0.000000e+00> : vector<1xf32>
    %155 = vector.multi_reduction <add>, %154, %cst_55 [0] : vector<8x1xf32> to vector<1xf32>
    %156 = vector.shape_cast %155 : vector<1xf32> to vector<1x1xf32>
    %157 = vector.broadcast %156 : vector<1x1xf32> to vector<8x1xf32>
    %158 = arith.divf %154, %157 : vector<8x1xf32>
    %159 = vector.broadcast %158 : vector<8x1xf32> to vector<8x32xf32>
    %160 = arith.mulf %159, %32 : vector<8x32xf32>
    %cst_56 = arith.constant dense<0.000000e+00> : vector<32xf32>
    %161 = vector.multi_reduction <add>, %160, %cst_56 [0] : vector<8x32xf32> to vector<32xf32>
    %162 = vector.shape_cast %161 : vector<32xf32> to vector<1x32xf32>
    %163 = vector.broadcast %10 : vector<1x32xf32> to vector<8x32xf32>
    %164 = arith.mulf %33, %163 : vector<8x32xf32>
    %cst_57 = arith.constant dense<0.000000e+00> : vector<8xf32>
    %165 = vector.multi_reduction <add>, %164, %cst_57 [1] : vector<8x32xf32> to vector<8xf32>
    %166 = vector.shape_cast %165 : vector<8xf32> to vector<8x1xf32>
    %cst_58 = arith.constant dense<0xFF800000> : vector<1xf32>
    %167 = vector.multi_reduction <maximumf>, %166, %cst_58 [0] : vector<8x1xf32> to vector<1xf32>
    %168 = vector.shape_cast %167 : vector<1xf32> to vector<1x1xf32>
    %169 = vector.broadcast %168 : vector<1x1xf32> to vector<8x1xf32>
    %170 = arith.subf %166, %169 : vector<8x1xf32>
    %171 = math.exp %170 : vector<8x1xf32>
    %cst_59 = arith.constant dense<0.000000e+00> : vector<1xf32>
    %172 = vector.multi_reduction <add>, %171, %cst_59 [0] : vector<8x1xf32> to vector<1xf32>
    %173 = vector.shape_cast %172 : vector<1xf32> to vector<1x1xf32>
    %174 = vector.broadcast %173 : vector<1x1xf32> to vector<8x1xf32>
    %175 = arith.divf %171, %174 : vector<8x1xf32>
    %176 = vector.broadcast %175 : vector<8x1xf32> to vector<8x32xf32>
    %177 = arith.mulf %176, %33 : vector<8x32xf32>
    %cst_60 = arith.constant dense<0.000000e+00> : vector<32xf32>
    %178 = vector.multi_reduction <add>, %177, %cst_60 [0] : vector<8x32xf32> to vector<32xf32>
    %179 = vector.shape_cast %178 : vector<32xf32> to vector<1x32xf32>
    %180 = vector.extract_strided_slice %14 {offsets = [8, 0], sizes = [8, 32], strides = [1, 1]} : vector<16x32xf32> to vector<8x32xf32>
    %181 = vector.extract_strided_slice %22 {offsets = [8, 0], sizes = [8, 32], strides = [1, 1]} : vector<16x32xf32> to vector<8x32xf32>
    %182 = vector.extract_strided_slice %18 {offsets = [8, 0], sizes = [8, 32], strides = [1, 1]} : vector<16x32xf32> to vector<8x32xf32>
    %183 = vector.extract_strided_slice %26 {offsets = [8, 0], sizes = [8, 32], strides = [1, 1]} : vector<16x32xf32> to vector<8x32xf32>
    %184 = vector.extract_strided_slice %30 {offsets = [8, 0], sizes = [8, 32], strides = [1, 1]} : vector<16x32xf32> to vector<8x32xf32>
    %185 = vector.broadcast %7 : vector<1x32xf32> to vector<8x32xf32>
    %186 = arith.addf %180, %185 : vector<8x32xf32>
    %187 = vector.extract_strided_slice %182 {offsets = [0, 0], sizes = [8, 8], strides = [1, 1]} : vector<8x32xf32> to vector<8x8xf32>
    %188 = vector.extract_strided_slice %183 {offsets = [0, 0], sizes = [8, 8], strides = [1, 1]} : vector<8x32xf32> to vector<8x8xf32>
    %189 = vector.extract_strided_slice %184 {offsets = [0, 0], sizes = [8, 8], strides = [1, 1]} : vector<8x32xf32> to vector<8x8xf32>
    %cst_61 = arith.constant dense<0.000000e+00> : vector<8x8xf32>
    %190 = tpu.matmul %187, %188, %cst_61 {dimension_numbers = #tpu.dot_dimension_numbers<[1], [1], [0], [0], [0, 0, 1, 0], [], []>} : vector<8x8xf32>, vector<8x8xf32>, vector<8x8xf32> -> vector<8x8xf32>
    %cst_62 = arith.constant dense<0xFF800000> : vector<8xf32>
    %191 = vector.multi_reduction <maximumf>, %190, %cst_62 [1] : vector<8x8xf32> to vector<8xf32>
    %192 = vector.shape_cast %191 : vector<8xf32> to vector<8x1xf32>
    %193 = vector.broadcast %192 : vector<8x1xf32> to vector<8x8xf32>
    %194 = arith.subf %190, %193 : vector<8x8xf32>
    %195 = math.exp %194 : vector<8x8xf32>
    %cst_63 = arith.constant dense<0.000000e+00> : vector<8xf32>
    %196 = vector.multi_reduction <add>, %195, %cst_63 [1] : vector<8x8xf32> to vector<8xf32>
    %197 = vector.shape_cast %196 : vector<8xf32> to vector<8x1xf32>
    %198 = vector.broadcast %197 : vector<8x1xf32> to vector<8x8xf32>
    %199 = arith.divf %195, %198 : vector<8x8xf32>
    %cst_64 = arith.constant dense<0.000000e+00> : vector<8x8xf32>
    %200 = tpu.matmul %199, %189, %cst_64 {dimension_numbers = #tpu.dot_dimension_numbers<[1], [0], [0], [1], [0, 0, 1, 1], [], []>} : vector<8x8xf32>, vector<8x8xf32>, vector<8x8xf32> -> vector<8x8xf32>
    %201 = vector.extract_strided_slice %31 {offsets = [0, 0], sizes = [8, 32], strides = [1, 1]} : vector<32x32xf32> to vector<8x32xf32>
    %cst_65 = arith.constant dense<0.000000e+00> : vector<8x32xf32>
    %202 = tpu.matmul %200, %201, %cst_65 {dimension_numbers = #tpu.dot_dimension_numbers<[1], [0], [0], [1], [0, 0, 1, 1], [], []>} : vector<8x8xf32>, vector<8x32xf32>, vector<8x32xf32> -> vector<8x32xf32>
    %203 = arith.addf %186, %202 : vector<8x32xf32>
    %204 = vector.extract_strided_slice %182 {offsets = [0, 8], sizes = [8, 8], strides = [1, 1]} : vector<8x32xf32> to vector<8x8xf32>
    %205 = vector.extract_strided_slice %183 {offsets = [0, 8], sizes = [8, 8], strides = [1, 1]} : vector<8x32xf32> to vector<8x8xf32>
    %206 = vector.extract_strided_slice %184 {offsets = [0, 8], sizes = [8, 8], strides = [1, 1]} : vector<8x32xf32> to vector<8x8xf32>
    %cst_66 = arith.constant dense<0.000000e+00> : vector<8x8xf32>
    %207 = tpu.matmul %204, %205, %cst_66 {dimension_numbers = #tpu.dot_dimension_numbers<[1], [1], [0], [0], [0, 0, 1, 0], [], []>} : vector<8x8xf32>, vector<8x8xf32>, vector<8x8xf32> -> vector<8x8xf32>
    %cst_67 = arith.constant dense<0xFF800000> : vector<8xf32>
    %208 = vector.multi_reduction <maximumf>, %207, %cst_67 [1] : vector<8x8xf32> to vector<8xf32>
    %209 = vector.shape_cast %208 : vector<8xf32> to vector<8x1xf32>
    %210 = vector.broadcast %209 : vector<8x1xf32> to vector<8x8xf32>
    %211 = arith.subf %207, %210 : vector<8x8xf32>
    %212 = math.exp %211 : vector<8x8xf32>
    %cst_68 = arith.constant dense<0.000000e+00> : vector<8xf32>
    %213 = vector.multi_reduction <add>, %212, %cst_68 [1] : vector<8x8xf32> to vector<8xf32>
    %214 = vector.shape_cast %213 : vector<8xf32> to vector<8x1xf32>
    %215 = vector.broadcast %214 : vector<8x1xf32> to vector<8x8xf32>
    %216 = arith.divf %212, %215 : vector<8x8xf32>
    %cst_69 = arith.constant dense<0.000000e+00> : vector<8x8xf32>
    %217 = tpu.matmul %216, %206, %cst_69 {dimension_numbers = #tpu.dot_dimension_numbers<[1], [0], [0], [1], [0, 0, 1, 1], [], []>} : vector<8x8xf32>, vector<8x8xf32>, vector<8x8xf32> -> vector<8x8xf32>
    %218 = vector.extract_strided_slice %31 {offsets = [8, 0], sizes = [8, 32], strides = [1, 1]} : vector<32x32xf32> to vector<8x32xf32>
    %cst_70 = arith.constant dense<0.000000e+00> : vector<8x32xf32>
    %219 = tpu.matmul %217, %218, %cst_70 {dimension_numbers = #tpu.dot_dimension_numbers<[1], [0], [0], [1], [0, 0, 1, 1], [], []>} : vector<8x8xf32>, vector<8x32xf32>, vector<8x32xf32> -> vector<8x32xf32>
    %220 = arith.addf %203, %219 : vector<8x32xf32>
    %221 = vector.extract_strided_slice %182 {offsets = [0, 16], sizes = [8, 8], strides = [1, 1]} : vector<8x32xf32> to vector<8x8xf32>
    %222 = vector.extract_strided_slice %183 {offsets = [0, 16], sizes = [8, 8], strides = [1, 1]} : vector<8x32xf32> to vector<8x8xf32>
    %223 = vector.extract_strided_slice %184 {offsets = [0, 16], sizes = [8, 8], strides = [1, 1]} : vector<8x32xf32> to vector<8x8xf32>
    %cst_71 = arith.constant dense<0.000000e+00> : vector<8x8xf32>
    %224 = tpu.matmul %221, %222, %cst_71 {dimension_numbers = #tpu.dot_dimension_numbers<[1], [1], [0], [0], [0, 0, 1, 0], [], []>} : vector<8x8xf32>, vector<8x8xf32>, vector<8x8xf32> -> vector<8x8xf32>
    %cst_72 = arith.constant dense<0xFF800000> : vector<8xf32>
    %225 = vector.multi_reduction <maximumf>, %224, %cst_72 [1] : vector<8x8xf32> to vector<8xf32>
    %226 = vector.shape_cast %225 : vector<8xf32> to vector<8x1xf32>
    %227 = vector.broadcast %226 : vector<8x1xf32> to vector<8x8xf32>
    %228 = arith.subf %224, %227 : vector<8x8xf32>
    %229 = math.exp %228 : vector<8x8xf32>
    %cst_73 = arith.constant dense<0.000000e+00> : vector<8xf32>
    %230 = vector.multi_reduction <add>, %229, %cst_73 [1] : vector<8x8xf32> to vector<8xf32>
    %231 = vector.shape_cast %230 : vector<8xf32> to vector<8x1xf32>
    %232 = vector.broadcast %231 : vector<8x1xf32> to vector<8x8xf32>
    %233 = arith.divf %229, %232 : vector<8x8xf32>
    %cst_74 = arith.constant dense<0.000000e+00> : vector<8x8xf32>
    %234 = tpu.matmul %233, %223, %cst_74 {dimension_numbers = #tpu.dot_dimension_numbers<[1], [0], [0], [1], [0, 0, 1, 1], [], []>} : vector<8x8xf32>, vector<8x8xf32>, vector<8x8xf32> -> vector<8x8xf32>
    %235 = vector.extract_strided_slice %31 {offsets = [16, 0], sizes = [8, 32], strides = [1, 1]} : vector<32x32xf32> to vector<8x32xf32>
    %cst_75 = arith.constant dense<0.000000e+00> : vector<8x32xf32>
    %236 = tpu.matmul %234, %235, %cst_75 {dimension_numbers = #tpu.dot_dimension_numbers<[1], [0], [0], [1], [0, 0, 1, 1], [], []>} : vector<8x8xf32>, vector<8x32xf32>, vector<8x32xf32> -> vector<8x32xf32>
    %237 = arith.addf %220, %236 : vector<8x32xf32>
    %238 = vector.extract_strided_slice %182 {offsets = [0, 24], sizes = [8, 8], strides = [1, 1]} : vector<8x32xf32> to vector<8x8xf32>
    %239 = vector.extract_strided_slice %183 {offsets = [0, 24], sizes = [8, 8], strides = [1, 1]} : vector<8x32xf32> to vector<8x8xf32>
    %240 = vector.extract_strided_slice %184 {offsets = [0, 24], sizes = [8, 8], strides = [1, 1]} : vector<8x32xf32> to vector<8x8xf32>
    %cst_76 = arith.constant dense<0.000000e+00> : vector<8x8xf32>
    %241 = tpu.matmul %238, %239, %cst_76 {dimension_numbers = #tpu.dot_dimension_numbers<[1], [1], [0], [0], [0, 0, 1, 0], [], []>} : vector<8x8xf32>, vector<8x8xf32>, vector<8x8xf32> -> vector<8x8xf32>
    %cst_77 = arith.constant dense<0xFF800000> : vector<8xf32>
    %242 = vector.multi_reduction <maximumf>, %241, %cst_77 [1] : vector<8x8xf32> to vector<8xf32>
    %243 = vector.shape_cast %242 : vector<8xf32> to vector<8x1xf32>
    %244 = vector.broadcast %243 : vector<8x1xf32> to vector<8x8xf32>
    %245 = arith.subf %241, %244 : vector<8x8xf32>
    %246 = math.exp %245 : vector<8x8xf32>
    %cst_78 = arith.constant dense<0.000000e+00> : vector<8xf32>
    %247 = vector.multi_reduction <add>, %246, %cst_78 [1] : vector<8x8xf32> to vector<8xf32>
    %248 = vector.shape_cast %247 : vector<8xf32> to vector<8x1xf32>
    %249 = vector.broadcast %248 : vector<8x1xf32> to vector<8x8xf32>
    %250 = arith.divf %246, %249 : vector<8x8xf32>
    %cst_79 = arith.constant dense<0.000000e+00> : vector<8x8xf32>
    %251 = tpu.matmul %250, %240, %cst_79 {dimension_numbers = #tpu.dot_dimension_numbers<[1], [0], [0], [1], [0, 0, 1, 1], [], []>} : vector<8x8xf32>, vector<8x8xf32>, vector<8x8xf32> -> vector<8x8xf32>
    %252 = vector.extract_strided_slice %31 {offsets = [24, 0], sizes = [8, 32], strides = [1, 1]} : vector<32x32xf32> to vector<8x32xf32>
    %cst_80 = arith.constant dense<0.000000e+00> : vector<8x32xf32>
    %253 = tpu.matmul %251, %252, %cst_80 {dimension_numbers = #tpu.dot_dimension_numbers<[1], [0], [0], [1], [0, 0, 1, 1], [], []>} : vector<8x8xf32>, vector<8x32xf32>, vector<8x32xf32> -> vector<8x32xf32>
    %254 = arith.addf %237, %253 : vector<8x32xf32>
    %cst_81 = arith.constant dense<0.000000e+00> : vector<8xf32>
    %255 = vector.multi_reduction <add>, %254, %cst_81 [1] : vector<8x32xf32> to vector<8xf32>
    %256 = vector.shape_cast %255 : vector<8xf32> to vector<8x1xf32>
    %cst_82 = arith.constant 3.200000e+01 : f32
    %257 = vector.broadcast %cst_82 : f32 to vector<8x1xf32>
    %258 = arith.divf %256, %257 : vector<8x1xf32>
    %259 = vector.broadcast %258 : vector<8x1xf32> to vector<8x32xf32>
    %260 = arith.subf %254, %259 : vector<8x32xf32>
    %261 = arith.mulf %260, %260 : vector<8x32xf32>
    %cst_83 = arith.constant dense<0.000000e+00> : vector<8xf32>
    %262 = vector.multi_reduction <add>, %261, %cst_83 [1] : vector<8x32xf32> to vector<8xf32>
    %263 = vector.shape_cast %262 : vector<8xf32> to vector<8x1xf32>
    %cst_84 = arith.constant 3.200000e+01 : f32
    %264 = vector.broadcast %cst_84 : f32 to vector<8x1xf32>
    %265 = arith.divf %263, %264 : vector<8x1xf32>
    %266 = vector.broadcast %258 : vector<8x1xf32> to vector<8x32xf32>
    %267 = arith.subf %254, %266 : vector<8x32xf32>
    %cst_85 = arith.constant 9.99999974E-6 : f32
    %268 = vector.broadcast %cst_85 : f32 to vector<8x1xf32>
    %269 = arith.addf %265, %268 : vector<8x1xf32>
    %270 = math.rsqrt %269 : vector<8x1xf32>
    %271 = vector.broadcast %270 : vector<8x1xf32> to vector<8x32xf32>
    %272 = arith.mulf %267, %271 : vector<8x32xf32>
    %273 = vector.broadcast %8 : vector<1x32xf32> to vector<8x32xf32>
    %274 = arith.mulf %272, %273 : vector<8x32xf32>
    %275 = vector.broadcast %9 : vector<1x32xf32> to vector<8x32xf32>
    %276 = arith.addf %274, %275 : vector<8x32xf32>
    %277 = vector.broadcast %10 : vector<1x32xf32> to vector<8x32xf32>
    %278 = arith.mulf %276, %277 : vector<8x32xf32>
    %cst_86 = arith.constant dense<0.000000e+00> : vector<8xf32>
    %279 = vector.multi_reduction <add>, %278, %cst_86 [1] : vector<8x32xf32> to vector<8xf32>
    %280 = vector.shape_cast %279 : vector<8xf32> to vector<8x1xf32>
    %cst_87 = arith.constant dense<0xFF800000> : vector<1xf32>
    %281 = vector.multi_reduction <maximumf>, %280, %cst_87 [0] : vector<8x1xf32> to vector<1xf32>
    %282 = vector.shape_cast %281 : vector<1xf32> to vector<1x1xf32>
    %283 = vector.broadcast %282 : vector<1x1xf32> to vector<8x1xf32>
    %284 = arith.subf %280, %283 : vector<8x1xf32>
    %285 = math.exp %284 : vector<8x1xf32>
    %cst_88 = arith.constant dense<0.000000e+00> : vector<1xf32>
    %286 = vector.multi_reduction <add>, %285, %cst_88 [0] : vector<8x1xf32> to vector<1xf32>
    %287 = vector.shape_cast %286 : vector<1xf32> to vector<1x1xf32>
    %288 = vector.broadcast %287 : vector<1x1xf32> to vector<8x1xf32>
    %289 = arith.divf %285, %288 : vector<8x1xf32>
    %290 = vector.broadcast %289 : vector<8x1xf32> to vector<8x32xf32>
    %291 = arith.mulf %290, %276 : vector<8x32xf32>
    %cst_89 = arith.constant dense<0.000000e+00> : vector<32xf32>
    %292 = vector.multi_reduction <add>, %291, %cst_89 [0] : vector<8x32xf32> to vector<32xf32>
    %293 = vector.shape_cast %292 : vector<32xf32> to vector<1x32xf32>
    %294 = vector.broadcast %10 : vector<1x32xf32> to vector<8x32xf32>
    %295 = arith.mulf %180, %294 : vector<8x32xf32>
    %cst_90 = arith.constant dense<0.000000e+00> : vector<8xf32>
    %296 = vector.multi_reduction <add>, %295, %cst_90 [1] : vector<8x32xf32> to vector<8xf32>
    %297 = vector.shape_cast %296 : vector<8xf32> to vector<8x1xf32>
    %cst_91 = arith.constant dense<0xFF800000> : vector<1xf32>
    %298 = vector.multi_reduction <maximumf>, %297, %cst_91 [0] : vector<8x1xf32> to vector<1xf32>
    %299 = vector.shape_cast %298 : vector<1xf32> to vector<1x1xf32>
    %300 = vector.broadcast %299 : vector<1x1xf32> to vector<8x1xf32>
    %301 = arith.subf %297, %300 : vector<8x1xf32>
    %302 = math.exp %301 : vector<8x1xf32>
    %cst_92 = arith.constant dense<0.000000e+00> : vector<1xf32>
    %303 = vector.multi_reduction <add>, %302, %cst_92 [0] : vector<8x1xf32> to vector<1xf32>
    %304 = vector.shape_cast %303 : vector<1xf32> to vector<1x1xf32>
    %305 = vector.broadcast %304 : vector<1x1xf32> to vector<8x1xf32>
    %306 = arith.divf %302, %305 : vector<8x1xf32>
    %307 = vector.broadcast %306 : vector<8x1xf32> to vector<8x32xf32>
    %308 = arith.mulf %307, %180 : vector<8x32xf32>
    %cst_93 = arith.constant dense<0.000000e+00> : vector<32xf32>
    %309 = vector.multi_reduction <add>, %308, %cst_93 [0] : vector<8x32xf32> to vector<32xf32>
    %310 = vector.shape_cast %309 : vector<32xf32> to vector<1x32xf32>
    %311 = vector.broadcast %10 : vector<1x32xf32> to vector<8x32xf32>
    %312 = arith.mulf %181, %311 : vector<8x32xf32>
    %cst_94 = arith.constant dense<0.000000e+00> : vector<8xf32>
    %313 = vector.multi_reduction <add>, %312, %cst_94 [1] : vector<8x32xf32> to vector<8xf32>
    %314 = vector.shape_cast %313 : vector<8xf32> to vector<8x1xf32>
    %cst_95 = arith.constant dense<0xFF800000> : vector<1xf32>
    %315 = vector.multi_reduction <maximumf>, %314, %cst_95 [0] : vector<8x1xf32> to vector<1xf32>
    %316 = vector.shape_cast %315 : vector<1xf32> to vector<1x1xf32>
    %317 = vector.broadcast %316 : vector<1x1xf32> to vector<8x1xf32>
    %318 = arith.subf %314, %317 : vector<8x1xf32>
    %319 = math.exp %318 : vector<8x1xf32>
    %cst_96 = arith.constant dense<0.000000e+00> : vector<1xf32>
    %320 = vector.multi_reduction <add>, %319, %cst_96 [0] : vector<8x1xf32> to vector<1xf32>
    %321 = vector.shape_cast %320 : vector<1xf32> to vector<1x1xf32>
    %322 = vector.broadcast %321 : vector<1x1xf32> to vector<8x1xf32>
    %323 = arith.divf %319, %322 : vector<8x1xf32>
    %324 = vector.broadcast %323 : vector<8x1xf32> to vector<8x32xf32>
    %325 = arith.mulf %324, %181 : vector<8x32xf32>
    %cst_97 = arith.constant dense<0.000000e+00> : vector<32xf32>
    %326 = vector.multi_reduction <add>, %325, %cst_97 [0] : vector<8x32xf32> to vector<32xf32>
    %327 = vector.shape_cast %326 : vector<32xf32> to vector<1x32xf32>
    %328 = tpu.concatenate %145, %293 in 0 : vector<1x32xf32>, vector<1x32xf32> -> vector<2x32xf32>
    %c248 = arith.constant 248 : index
    %c0_98 = arith.constant 0 : index
    %329 = vector.load %arg2[%c248, %c0_98] : memref<344x32xf32, #tpu.memory_space<vmem>>, vector<32x32xf32>
    %c9 = arith.constant 9 : index
    %c0_99 = arith.constant 0 : index
    %330 = vector.load %arg3[%c9, %c0_99] : memref<12x32xf32, #tpu.memory_space<vmem>>, vector<1x32xf32>
    %cst_100 = arith.constant dense<0.000000e+00> : vector<2x32xf32>
    %331 = tpu.matmul %328, %329, %cst_100 {dimension_numbers = #tpu.dot_dimension_numbers<[1], [0], [0], [1], [0, 0, 1, 1], [], []>} : vector<2x32xf32>, vector<32x32xf32>, vector<2x32xf32> -> vector<2x32xf32>
    %332 = vector.broadcast %330 : vector<1x32xf32> to vector<2x32xf32>
    %333 = arith.addf %331, %332 : vector<2x32xf32>
    %cst_101 = arith.constant 0.000000e+00 : f32
    %334 = vector.broadcast %cst_101 : f32 to vector<2x32xf32>
    %335 = arith.cmpf ogt, %333, %334 : vector<2x32xf32>
    %cst_102 = arith.constant 0.00999999977 : f32
    %336 = vector.broadcast %cst_102 : f32 to vector<2x32xf32>
    %337 = arith.mulf %336, %333 : vector<2x32xf32>
    %338 = arith.select %335, %333, %337 : vector<2x32xi1>, vector<2x32xf32>
    %c280 = arith.constant 280 : index
    %c0_103 = arith.constant 0 : index
    %339 = vector.load %arg2[%c280, %c0_103] : memref<344x32xf32, #tpu.memory_space<vmem>>, vector<32x32xf32>
    %c10 = arith.constant 10 : index
    %c0_104 = arith.constant 0 : index
    %340 = vector.load %arg3[%c10, %c0_104] : memref<12x32xf32, #tpu.memory_space<vmem>>, vector<1x32xf32>
    %cst_105 = arith.constant dense<0.000000e+00> : vector<2x32xf32>
    %341 = tpu.matmul %338, %339, %cst_105 {dimension_numbers = #tpu.dot_dimension_numbers<[1], [0], [0], [1], [0, 0, 1, 1], [], []>} : vector<2x32xf32>, vector<32x32xf32>, vector<2x32xf32> -> vector<2x32xf32>
    %342 = vector.broadcast %340 : vector<1x32xf32> to vector<2x32xf32>
    %343 = arith.addf %341, %342 : vector<2x32xf32>
    %cst_106 = arith.constant 0.000000e+00 : f32
    %344 = vector.broadcast %cst_106 : f32 to vector<2x32xf32>
    %345 = arith.cmpf ogt, %343, %344 : vector<2x32xf32>
    %cst_107 = arith.constant 0.00999999977 : f32
    %346 = vector.broadcast %cst_107 : f32 to vector<2x32xf32>
    %347 = arith.mulf %346, %343 : vector<2x32xf32>
    %348 = arith.select %345, %343, %347 : vector<2x32xi1>, vector<2x32xf32>
    %c312 = arith.constant 312 : index
    %c0_108 = arith.constant 0 : index
    %349 = vector.load %arg2[%c312, %c0_108] : memref<344x32xf32, #tpu.memory_space<vmem>>, vector<32x32xf32>
    %c11 = arith.constant 11 : index
    %c0_109 = arith.constant 0 : index
    %350 = vector.load %arg3[%c11, %c0_109] : memref<12x32xf32, #tpu.memory_space<vmem>>, vector<1x32xf32>
    %cst_110 = arith.constant dense<0.000000e+00> : vector<2x32xf32>
    %351 = tpu.matmul %348, %349, %cst_110 {dimension_numbers = #tpu.dot_dimension_numbers<[1], [0], [0], [1], [0, 0, 1, 1], [], []>} : vector<2x32xf32>, vector<32x32xf32>, vector<2x32xf32> -> vector<2x32xf32>
    %352 = vector.broadcast %350 : vector<1x32xf32> to vector<2x32xf32>
    %353 = arith.addf %351, %352 : vector<2x32xf32>
    %354 = tpu.concatenate %162, %310 in 0 : vector<1x32xf32>, vector<1x32xf32> -> vector<2x32xf32>
    %355 = tpu.concatenate %179, %327 in 0 : vector<1x32xf32>, vector<1x32xf32> -> vector<2x32xf32>
    %356 = tpu.concatenate %353, %354, %355 in 0 : vector<2x32xf32>, vector<2x32xf32>, vector<2x32xf32> -> vector<6x32xf32>
    %c0_111 = arith.constant 0 : index
    %c0_112 = arith.constant 0 : index
    %357 = vector.load %arg4[%c0_111, %c0_112] : memref<6x32xf32, #tpu.memory_space<vmem>>, vector<6x32xf32>
    tpu.vector_store %arg4[%c0_111, %c0_112], %356 {strides = array<i32>} : memref<6x32xf32, #tpu.memory_space<vmem>>, vector<6x32xf32>,
    return
  }
}

</mosaic_0001>

<bundles_post_ra>
// kernel: _rafm_ser_forward.1
= control target key start
LH: loop header
LB: loop body
LE: loop exit
PB: predicated region body
PF: predicated region fallthrough
CT: control target
= control target key end

     0   :  { %vm103_vm0 = vcmask 326656   ;;  %vm37_vm1 = vcmask 392192   ;;  %vm197_vm2 = vcmask 64512   ;;  %s1554_s14 = smov 120   ;;  %s1555_s17 = smov 112   ;;  %s2018_s2 = inlined_call_operand.vmem [shape: f32[344,32], index: 2, kind: input, shape index: {}]   ;;  %s2019_s1 = inlined_call_operand.vmem [shape: f32[16,40], index: 1, kind: input, shape index: {}]   ;;  %s2020_s3 = inlined_call_operand.vmem [shape: f32[12,32], index: 3, kind: input, shape index: {}]   ;;  %s2021_s0 = inlined_call_operand.vmem [shape: f32[16,48], index: 0, kind: input, shape index: {}]   ;;  %s2022_s4 = inlined_call_operand.vmem [shape: f32[6,32], index: 4, kind: output, shape index: {}]  }
   0x1   :  { %v101_v0 = vld [vmem:[%s2018_s2 + $0x80] sm:$0xff]  ;;  %v137_v1 = vld [vmem:[%s2018_s2 + $0xa8] sm:$0xff]  ;;  %v100_v2 = vld [vmem:[%s2018_s2 + $0x78] sm:$0xff]  ;;  %s1556_s18 = smov 104  }
   0x2   :  { %121 = vmatpush.msra.mxu2 %v101_v0  ;;  %150 = vmatpush.msra.mxu3 %v137_v1  ;;  %v136_v3 = vld [vmem:[%s2018_s2 + $0xa0] sm:$0xff]  ;;  %v99_v4 = vld [vmem:[%s2018_s2 + $0x70] sm:$0xff]  ;;  %v135_v5 = vld [vmem:[%s2018_s2 + $0x98] sm:$0xff] }
   0x3   :  { %v72_v6 = vld [vmem:[%s2018_s2 + $0x58] sm:$0xff]  ;;  %v71_v7 = vld [vmem:[%s2018_s2 + $0x50] sm:$0xff]  ;;  %v98_v8 = vld [vmem:[%s2018_s2 + $0x68] sm:$0xff] }
   0x4   :  { %122 = vmatpush.msra.mxu2 %v100_v2  ;;  %151 = vmatpush.msra.mxu3 %v136_v3  ;;  %v134_v9 = vld [vmem:[%s2018_s2 + $0x90] sm:$0xff]  ;;  %v70_v10 = vld [vmem:[%s2018_s2 + $0x48] sm:$0xff]  ;;  %v97_v11 = vld [vmem:[%s2018_s2 + $0x60] sm:$0xff] }
   0x5   :  { %84 = vmatpush.msra.mxu1 %v72_v6  ;;  %v133_v12 = vld [vmem:[%s2018_s2 + $0x88] sm:$0xff]  ;;  %v19_v13 = vld [vmem:[%s2019_s1] sm:$0xff]  ;;  %v166_v15 = vld [vmem:[%s2018_s2 + $0xd0] sm:$0xff] }
   0x6   :  { %123 = vmatpush.msra.mxu2 %v99_v4  ;;  %152 = vmatpush.msra.mxu3 %v135_v5  ;;  %v69_v14 = vld [vmem:[%s2018_s2 + $0x40] sm:$0xff]  ;;  %v68_v16 = vld [vmem:[%s2018_s2 + $0x38] sm:$0xff]  ;;  %v165_v17 = vld [vmem:[%s2018_s2 + $0xc8] sm:$0xff] }
   0x7   :  { %85 = vmatpush.msra.mxu1 %v71_v7  ;;  %v67_v18 = vld [vmem:[%s2018_s2 + $0x30] sm:$0xff]  ;;  %v164_v19 = vld [vmem:[%s2018_s2 + $0xc0] sm:$0xff]  ;;  %v163_v21 = vld [vmem:[%s2018_s2 + $0xb8] sm:$0xff] }
   0x8   :  { %124 = vmatpush.msra.mxu2 %v98_v8  ;;  %153 = vmatpush.msra.mxu3 %v134_v9  ;;  %v1648_v20 = vld [vmem:[%s2021_s0] sm:$0xff]  ;;  %v20_v22 = vld [vmem:[%s2019_s1 + $0x8] sm:$0xff]  ;;  %v162_v23 = vld [vmem:[%s2018_s2 + $0xb0] sm:$0xff] }
   0x9   :  { %86 = vmatpush.msra.mxu1 %v70_v10  ;;  %v1668_v24 = vld [vmem:[%s2020_s3 + $0x3] ss:$0 sm:$0xff]  ;;  %v1673_v25 = vld [vmem:[%s2020_s3 + $0x2] ss:$0 sm:$0xff]  ;;  %v1692_v32 = vld [vmem:[%s2020_s3 + $0x4] ss:$0 sm:$0xff] }
   0xa   :  { %125 = vmatpush.msra.mxu2 %v97_v11  ;;  %154 = vmatpush.msra.mxu3 %v133_v12  ;;  %v35_v47 = vld [vmem:[%s2018_s2 + $0x28] sm:$0xff]  ;;  %v34_v48 = vld [vmem:[%s2018_s2 + $0x20] sm:$0xff]  ;;  %v33_v49 = vld [vmem:[%s2018_s2 + $0x18] sm:$0xff] }
   0xb   :  { %1435 = vmatmul.msk.f32.vlgmr.msra.gmra.mxu2 %vm103_vm0, %v19_v13  ;;  %1437 = vmatmul.msk.f32.vlgmr.msra.gmra.mxu3 %vm103_vm0, %v19_v13  ;;  %v32_v50 = vld [vmem:[%s2018_s2 + $0x10] sm:$0xff]  ;;  %v31_v51 = vld [vmem:[%s2018_s2 + $0x8] sm:$0xff]  ;;  %v30_v52 = vld [vmem:[%s2018_s2] sm:$0xff] }
   0xc   :  { %87 = vmatpush.msra.mxu1 %v69_v14  ;;  %179 = vmatpush.msrb.mxu2 %v166_v15  ;;  %v18_v54 = vld [vmem:[%s2021_s0 + $0x8] sm:$0xff]  ;;  %v1747_v11 = vld [vmem:[%s2020_s3] ss:$0 sm:$0xff]  ;;  %v1761_v15 = vld [vmem:[%s2018_s2 + $0xd8] sm:$0xff] }
   0xd   :  { %54 = vmatpush.msra.mxu0 %v35_v47  ;;  %v1752_v12 = vld [vmem:[%s2018_s2 + $0xe8] sm:$0xff] }
   0xe   :  { %88 = vmatpush.msra.mxu1 %v68_v16  ;;  %180 = vmatpush.msrb.mxu2 %v165_v17  ;;  %v192_v16 = vld [vmem:[%s2018_s2 + $0xe0] sm:$0xff] }
   0xf   :  { %55 = vmatpush.msra.mxu0 %v34_v48 }
  0x10   :  { %89 = vmatpush.msra.mxu1 %v67_v18  ;;  %181 = vmatpush.msrb.mxu2 %v164_v19 }
  0x11   :  { %1433 = vmatmul.msk.f32.vlgmr.msra.gmra.mxu1 %vm37_vm1, %v1648_v20  ;;  %56 = vmatpush.msra.mxu0 %v33_v49 }
  0x12   :  { %182 = vmatpush.msrb.mxu2 %v163_v21  ;;  %289 = vmatpush.msrb.mxu1 %v1761_v15 }
  0x13   :  { %1436 = vmatmul.msk.f32.gmra.mxu2 %vm103_vm0, %v20_v22  ;;  %1438 = vmatmul.msk.f32.gmra.mxu3 %vm103_vm0, %v20_v22 }
  0x14   :  { %183 = vmatpush.msrb.mxu2 %v162_v23  ;;  %57 = vmatpush.msra.mxu0 %v32_v50 }
  0x15   :  { %392 = vmatpush.msra.mxu1 %v192_v16 }
  0x16   :  { %58 = vmatpush.msra.mxu0 %v31_v51 }
  0x18   :  { %59 = vmatpush.msra.mxu0 %v30_v52 }
  0x19   :  { %1431 = vmatmul.msk.f32.vlgmr.msra.gmra.mxu0 %vm37_vm1, %v1648_v20  ;;  %1434 = vmatmul.msk.f32.gmra.mxu1 %vm37_vm1, %v18_v54 }
  0x1b   :  { %1439 = vmatmul.msk.f32.vlgmr.msrb.gmra.mxu2 %vm103_vm0, %v19_v13 }
  0x21   :  { %1432 = vmatmul.msk.f32.gmra.mxu0 %vm37_vm1, %v18_v54 }
  0x23   :  { %1440 = vmatmul.msk.f32.gmra.mxu2 %vm103_vm0, %v20_v22 }
  0x8e   :  { %v1675_v26 = vpop.f32.mrf.mxu2  ;;  %v156_v27 = vpop.f32.mrf.mxu3 }
  0x8f   :  { %v1678_v28 = vadd.f32 %v1668_v24, %v156_v27  ;;  %v91_v29 = vpop.f32.mrf.mxu1 }
  0x90   :  { %v92_v30 = vadd.f32 %v1673_v25, %v91_v29 }
  0x91   :  { %297 = vrot.lane.b32.xlu0 %v1678_v28, %s1554_s14  ;;  %1441 = vmatpush.xpose.msk.msrb.mxu3 %vm197_vm2, %v1678_v28 }
  0x94   :  { %1442 = vmatmul.msk.f32.vlgmr.msrb.gmra.mxu3 %vm197_vm2, %v92_v30 }
  0x96   :  { %v1686_v31 = vpop.f32.mrf.mxu2  ;;  %v1703_v37 = vpop.f32.mrf.mxu3 }
  0x97   :  { %v1742_v10 = vpop.f32.mrf.mxu0 }
  0x99   :  { %295 = vrot.lane.b32.xlu0 %v92_v30, %s1554_s14 }
  0x9e   :  { %v185_v33 = vpop.f32.mrf.mxu2 }
  0x9f   :  { %v1695_v34 = vadd.f32 %v1692_v32, %v185_v33  ;;  %v64_v13 = vpop.f32.mrf.mxu0 }
  0xa0   :  { %v1756_v14 = vadd.f32 %v1747_v11, %v64_v13 }
  0xa1   :  { %348 = vrot.lane.b32.xlu0 %v1695_v34, %s1554_s14  ;;  %266 = vmatpush.msrb.mxu0 %v1695_v34 }
  0xa9   :  { %398 = vrot.lane.b32.xlu0 %v92_v30, %s1555_s17 }
  0xb1   :  { %500 = vrot.lane.b32.xlu0 %v92_v30, %s1556_s18 }
 0x103   :  { %v298_v35 = vpop.permute.xlu0 %297 }
 0x104   :  { %1445 = vmatpush.xpose.msk.msra.mxu3 %vm197_vm2, %v298_v35  ;;  %v1769_v35 = vadd.f32 %v1668_v24, %v1703_v37 }
 0x10b   :  { %v296_v36 = vpop.permute.xlu0 %295 }
 0x10c   :  { %1446 = vmatmul.msk.f32.vlgmr.msra.gmra.mxu3 %vm197_vm2, %v296_v36  ;;  %v188_v36 = vpop.f32.mrf.mxu2 }
 0x113   :  { %v349_v53 = vpop.permute.xlu0 %348 }
 0x114   :  { %369 = vmatpush.msra.mxu0 %v349_v53 }
 0x117   :  { %v221_v38 = vpop.f32.mrf.mxu3 }
 0x118   :  { %v224_v39 = vsel %vm197_vm2, %v221_v38, -inf }
 0x119   :  { %225 = vmax.xlane.f32.xlu1 %v224_v39 }
 0x11b   :  { %v399_v9 = vpop.permute.xlu0 %398 }
 0x18c   :  { %v226_v40 = vpop.xlane.xlu1 %225 }
 0x18d   :  { %v227_v41 = vsub.f32 %v221_v38, %v226_v40 }
 0x18f   :  { %v228_v42 = vmul.f32 1.442695, %v227_v41  ;;  %v320_v43 = vpop.f32.mrf.mxu3 }
 0x190   :  { %v323_v44 = vsel %vm197_vm2, %v320_v43, -inf }
 0x191   :  { %1492 = vpow2.f32 %v228_v42  ;;  %324 = vmax.xlane.f32.xlu1 %v323_v44  ;;  %v1778_v42 = vadd.f32 %v1692_v32, %v188_v36  ;;  %v94_v32 = vpop.f32.mrf.mxu1 }
 0x192   :  { %v1794_v52 = vadd.f32 %v1673_v25, %v94_v32 }
 0x197   :  { %v1493_v45 = vpop.eup %1492 }
 0x198   :  { %v230_v46 = vsel %vm197_vm2, %v1493_v45, 0.0 }
 0x199   :  { %231 = vadd.xlane.f32.xlu2 %v230_v46 }
 0x1aa   :  { %400 = vrot.lane.b32.xlu1 %v1678_v28, %s1555_s17 }
 0x204   :  { %v325_v55 = vpop.xlane.xlu1 %324 }
 0x205   :  { %v326_v56 = vsub.f32 %v320_v43, %v325_v55 }
 0x207   :  { %v327_v57 = vmul.f32 1.442695, %v326_v56 }
 0x209   :  { %1494 = vpow2.f32 %v327_v57 }
 0x20c   :  { %v232_v58 = vpop.xlane.xlu2 %231 }
 0x20d   :  { %1496 = vrcp.f32 %v232_v58  ;;  %v244_v0 = vand.u32 2147483648, %v232_v58  ;;  %v242_v2 = vand.u32 2147483647, %v232_v58  ;;  %vm238_vm4 = vweird.f32 %v232_v58 }
 0x20f   :  { %v1495_v59 = vpop.eup %1494  ;;  %v245_v4 = vor.u32 1.1754944e-38, %v244_v0  ;;  %vm243_vm6 = vcmp.eq.f32.partialorder %v242_v2, 8.507059e+37 }
 0x210   :  { %v329_v60 = vsel %vm197_vm2, %v1495_v59, 0.0 }
 0x211   :  { %330 = vadd.xlane.f32.xlu2 %v329_v60 }
 0x213   :  { %v1497_v61 = vpop.eup %1496 }
 0x214   :  { %v234_v62 = vmul.f32 %v1497_v61, %v232_v58  ;;  %vm239_vm3 = vweird.f32 %v1497_v61 }
 0x215   :  { %vm240_vm5 = vmor %vm238_vm4, %vm239_vm3 }
 0x216   :  { %v235_v63 = vsub.f32 1.0, %v234_v62 }
 0x218   :  { %v236_v1 = vmul.f32 %v1497_v61, %v235_v63 }
 0x21a   :  { %v237_v3 = vadd.f32 %v1497_v61, %v236_v1 }
 0x21c   :  { %v401_v5 = vpop.permute.xlu1 %400  ;;  %v241_v6 = vsel %vm240_vm5, %v1497_v61, %v237_v3 }
 0x21d   :  { %1449 = vmatpush.xpose.msk.msra.mxu2 %vm197_vm2, %v401_v5  ;;  %v246_v7 = vsel %vm243_vm6, %v245_v4, %v241_v6 }
 0x21e   :  { %v247_v8 = vmul.f32 %v1493_v45, %v246_v7  ;;  %v501_v45 = vpop.permute.xlu0 %500 }
 0x220   :  { %1443 = vmatmul.msk.f32.vlgmr.msrb.gmra.mxu0 %vm197_vm2, %v247_v8  ;;  %1450 = vmatmul.msk.f32.vlgmr.msra.gmra.mxu2 %vm197_vm2, %v399_v9 }
 0x221   :  { %494 = vmatpush.msrb.mxu0 %v1752_v12 }
 0x229   :  { %502 = vrot.lane.b32.xlu2 %v1678_v28, %s1556_s18 }
 0x284   :  { %v331_v17 = vpop.xlane.xlu2 %330 }
 0x285   :  { %1498 = vrcp.f32 %v331_v17  ;;  %v343_v21 = vand.u32 2147483648, %v331_v17  ;;  %v341_v23 = vand.u32 2147483647, %v331_v17  ;;  %vm337_vm8 = vweird.f32 %v331_v17 }
 0x287   :  { %v344_v28 = vor.u32 1.1754944e-38, %v343_v21  ;;  %vm342_vm10 = vcmp.eq.f32.partialorder %v341_v23, 8.507059e+37 }
 0x28b   :  { %v1499_v18 = vpop.eup %1498 }
 0x28c   :  { %v333_v19 = vmul.f32 %v1499_v18, %v331_v17  ;;  %vm338_vm7 = vweird.f32 %v1499_v18  ;;  %v503_v39 = vpop.permute.xlu2 %502 }
 0x28d   :  { %vm339_vm9 = vmor %vm337_vm8, %vm338_vm7 }
 0x28e   :  { %v334_v20 = vsub.f32 1.0, %v333_v19 }
 0x290   :  { %v335_v22 = vmul.f32 %v1499_v18, %v334_v20 }
 0x292   :  { %v336_v27 = vadd.f32 %v1499_v18, %v335_v22  ;;  %v1806_v22 = vld [vmem:[%s2018_s2 + $0xf0] sm:$0xff] }
 0x294   :  { %v340_v29 = vsel %vm339_vm9, %v1499_v18, %v336_v27 }
 0x295   :  { %v345_v30 = vsel %vm342_vm10, %v344_v28, %v340_v29 }
 0x296   :  { %v346_v33 = vmul.f32 %v1495_v59, %v345_v30  ;;  %v1818_v30 = vadd.f32 %v1747_v11, %v1742_v10 }
 0x298   :  { %1447 = vmatmul.msk.f32.vlgmr.msra.gmra.mxu0 %vm197_vm2, %v346_v33  ;;  %v1823_v33 = vld [vmem:[%s2020_s3 + $0x5] ss:$0 sm:$0xff] }
 0x299   :  { %1457 = vmatpush.xpose.msk.msra.mxu0 %vm197_vm2, %v1769_v35  ;;  %v196_v36 = vadd.f32 %v1823_v33, %v1818_v30 }
 0x29d   :  { %v268_v38 = vpop.f32.mrf.mxu0 }
 0x29e   :  { %1444 = vmatmul.msk.f32.vlgmr.msrb.gmra.mxu1 %vm197_vm2, %v268_v38 }
 0x29f   :  { %1453 = vmatpush.xpose.msk.msrb.mxu1 %vm197_vm2, %v503_v39 }
 0x2a3   :  { %v423_v40 = vpop.f32.mrf.mxu2 }
 0x2a4   :  { %v426_v41 = vsel %vm197_vm2, %v423_v40, -inf }
 0x2a5   :  { %427 = vmax.xlane.f32.xlu2 %v426_v41 }
 0x315   :  { %v371_v24 = vpop.f32.mrf.mxu0 }
 0x316   :  { %1448 = vmatmul.msk.f32.vlgmr.msra.gmra.mxu1 %vm197_vm2, %v371_v24 }
 0x317   :  { %832 = vmatpush.msra.mxu1 %v1778_v42 }
 0x318   :  { %v428_v37 = vpop.xlane.xlu2 %427 }
 0x319   :  { %v429_v43 = vsub.f32 %v423_v40, %v428_v37 }
 0x31b   :  { %v430_v44 = vmul.f32 1.442695, %v429_v43  ;;  %v1786_v48 = vpop.f32.mrf.mxu1 }
 0x31c   :  { %v294_v38 = vadd.f32 %v1786_v48, %v196_v36 }
 0x31d   :  { %1500 = vpow2.f32 %v430_v44 }
 0x31e   :  { %1454 = vmatmul.msk.f32.vlgmr.msrb.gmra.mxu1 %vm197_vm2, %v501_v45 }
 0x31f   :  { %958 = vmatpush.msrb.mxu1 %v192_v16 }
 0x323   :  { %v1501_v46 = vpop.eup %1500 }
 0x324   :  { %v432_v47 = vsel %vm197_vm2, %v1501_v46, 0.0 }
 0x325   :  { %433 = vadd.xlane.f32.xlu2 %v432_v47 }
 0x33d   :  { %863 = vrot.lane.b32.xlu2 %v1769_v35, %s1554_s14 }
 0x393   :  { %v1788_v49 = vpop.f32.mrf.mxu1 }
 0x394   :  { %v397_v39 = vadd.f32 %v1788_v49, %v294_v38 }
 0x398   :  { %v434_v25 = vpop.xlane.xlu2 %433 }
 0x399   :  { %vm440_vm15 = vweird.f32 %v434_v25  ;;  %v444_v9 = vand.u32 2147483647, %v434_v25 }
 0x39b   :  { %v525_v50 = vpop.f32.mrf.mxu1  ;;  %vm445_vm3 = vcmp.eq.f32.partialorder %v444_v9, 8.507059e+37 }
 0x39c   :  { %v528_v51 = vsel %vm197_vm2, %v525_v50, -inf }
 0x39d   :  { %529 = vmax.xlane.f32.xlu0 %v528_v51 }
 0x3a0   :  { %v864_v23 = vpop.permute.xlu2 %863 }
 0x3b1   :  { %552 = vrot.lane.b32.xlu0 %v1695_v34, %s1556_s18 }
 0x3b9   :  { %861 = vrot.lane.b32.xlu0 %v1794_v52, %s1554_s14 }
 0x410   :  { %v530_v53 = vpop.xlane.xlu0 %529 }
 0x411   :  { %v531_v54 = vsub.f32 %v525_v50, %v530_v53 }
 0x413   :  { %v532_v55 = vmul.f32 1.442695, %v531_v54 }
 0x415   :  { %1502 = vpow2.f32 %v532_v55 }
 0x416   :  { %1504 = vrcp.f32 %v434_v25 }
 0x41b   :  { %v1503_v56 = vpop.eup %1502 }
 0x41c   :  { %v534_v57 = vsel %vm197_vm2, %v1503_v56, 0.0  ;;  %v1505_v59 = vpop.eup %1504 }
 0x41d   :  { %535 = vadd.xlane.f32.xlu1 %v534_v57  ;;  %v436_v61 = vmul.f32 %v1505_v59, %v434_v25  ;;  %vm441_vm12 = vweird.f32 %v1505_v59 }
 0x41e   :  { %vm442_vm1 = vmor %vm440_vm15, %vm441_vm12  ;;  %vm602_vm12 = vcmask 261120  }
 0x41f   :  { %v437_v62 = vsub.f32 1.0, %v436_v61 }
 0x421   :  { %v438_v1 = vmul.f32 %v1505_v59, %v437_v62 }
 0x423   :  { %v553_v58 = vpop.permute.xlu0 %552  ;;  %v439_v6 = vadd.f32 %v1505_v59, %v438_v1 }
 0x424   :  { %573 = vmatpush.msrb.mxu2 %v553_v58 }
 0x425   :  { %v443_v16 = vsel %vm442_vm1, %v1505_v59, %v439_v6 }
 0x426   :  { %855 = vmatpush.msra.mxu2 %v1761_v15 }
 0x42b   :  { %v862_v29 = vpop.permute.xlu0 %861 }
 0x436   :  { %450 = vrot.lane.b32.xlu1 %v1695_v34, %s1555_s17  ;;  %v446_v34 = vand.u32 2147483648, %v434_v25 }
 0x438   :  { %v447_v18 = vor.u32 1.1754944e-38, %v446_v34 }
 0x43a   :  { %v448_v19 = vsel %vm445_vm3, %v447_v18, %v443_v16 }
 0x43b   :  { %v449_v21 = vmul.f32 %v1501_v46, %v448_v19 }
 0x490   :  { %v536_v60 = vpop.xlane.xlu1 %535 }
 0x491   :  { %1506 = vrcp.f32 %v536_v60  ;;  %v548_v3 = vand.u32 2147483648, %v536_v60  ;;  %v546_v5 = vand.u32 2147483647, %v536_v60  ;;  %vm542_vm13 = vweird.f32 %v536_v60 }
 0x493   :  { %v549_v8 = vor.u32 1.1754944e-38, %v548_v3  ;;  %vm547_vm0 = vcmp.eq.f32.partialorder %v546_v5, 8.507059e+37 }
 0x497   :  { %v1507_v63 = vpop.eup %1506 }
 0x498   :  { %v538_v0 = vmul.f32 %v1507_v63, %v536_v60  ;;  %vm543_vm11 = vweird.f32 %v1507_v63 }
 0x499   :  { %vm544_vm14 = vmor %vm542_vm13, %vm543_vm11 }
 0x49a   :  { %v539_v2 = vsub.f32 1.0, %v538_v0 }
 0x49c   :  { %v540_v4 = vmul.f32 %v1507_v63, %v539_v2 }
 0x49e   :  { %v541_v7 = vadd.f32 %v1507_v63, %v540_v4 }
 0x4a0   :  { %v545_v13 = vsel %vm544_vm14, %v1507_v63, %v541_v7 }
 0x4a1   :  { %v550_v15 = vsel %vm547_vm0, %v549_v8, %v545_v13 }
 0x4a2   :  { %v551_v17 = vmul.f32 %v1503_v56, %v550_v15 }
 0x4a4   :  { %1455 = vmatmul.msk.f32.vlgmr.msrb.gmra.mxu2 %vm197_vm2, %v551_v17 }
 0x4a8   :  { %v451_v20 = vpop.permute.xlu1 %450 }
 0x4a9   :  { %471 = vmatpush.msrb.mxu3 %v451_v20 }
 0x4aa   :  { %1451 = vmatmul.msk.f32.vlgmr.msrb.gmra.mxu3 %vm197_vm2, %v449_v21 }
 0x4ab   :  { %596 = vmatpush.msra.mxu3 %v1806_v22 }
 0x4ad   :  { %1461 = vmatpush.xpose.msk.msrb.mxu3 %vm197_vm2, %v864_v23  ;;  %v763_v23 = vadd.f32 %v1823_v33, %v1756_v14 }
 0x527   :  { %v575_v27 = vpop.f32.mrf.mxu2 }
 0x528   :  { %1456 = vmatmul.msk.f32.vlgmr.msra.gmra.mxu3 %vm197_vm2, %v575_v27 }
 0x52d   :  { %v473_v28 = vpop.f32.mrf.mxu3 }
 0x52e   :  { %1452 = vmatmul.msk.f32.vlgmr.msrb.gmra.mxu0 %vm197_vm2, %v473_v28 }
 0x530   :  { %1462 = vmatmul.msk.f32.vlgmr.msrb.gmra.mxu3 %vm197_vm2, %v862_v29 }
 0x536   :  { %1458 = vmatmul.msk.f32.vlgmr.msra.gmra.mxu0 %vm197_vm2, %v1794_v52 }
 0x5ab   :  { %v496_v40 = vpop.f32.mrf.mxu0  ;;  %v598_v41 = vpop.f32.mrf.mxu3 }
 0x5ac   :  { %v499_v24 = vadd.f32 %v496_v40, %v397_v39 }
 0x5ae   :  { %v1829_v37 = vadd.f32 %v598_v41, %v499_v24 }
 0x5b3   :  { %v787_v43 = vpop.f32.mrf.mxu0  ;;  %v886_v10 = vpop.f32.mrf.mxu3 }
 0x5b4   :  { %v790_v11 = vsel %vm197_vm2, %v787_v43, -inf  ;;  %v889_v44 = vsel %vm197_vm2, %v886_v10, -inf }
 0x5b5   :  { %791 = vmax.xlane.f32.xlu1 %v790_v11  ;;  %890 = vmax.xlane.f32.xlu0 %v889_v44 }
 0x5c9   :  { %914 = vrot.lane.b32.xlu0 %v1778_v42, %s1554_s14 }
 0x5d1   :  { %964 = vrot.lane.b32.xlu0 %v1794_v52, %s1555_s17 }
 0x628   :  { %v792_v45 = vpop.xlane.xlu1 %791  ;;  %v891_v46 = vpop.xlane.xlu0 %890 }
 0x629   :  { %v793_v47 = vsub.f32 %v787_v43, %v792_v45  ;;  %v892_v32 = vsub.f32 %v886_v10, %v891_v46 }
 0x62b   :  { %v794_v48 = vmul.f32 1.442695, %v793_v47  ;;  %v893_v49 = vmul.f32 1.442695, %v892_v32  ;;  %v603_v32 = vsel %vm602_vm12, %v1829_v37, 0.0 }
 0x62d   :  { %1508 = vpow2.f32 %v794_v48 }
 0x62e   :  { %1510 = vpow2.f32 %v893_v49 }
 0x633   :  { %v1509_v50 = vpop.eup %1508 }
 0x634   :  { %v1511_v51 = vpop.eup %1510  ;;  %v796_v53 = vsel %vm197_vm2, %v1509_v50, 0.0 }
 0x635   :  { %797 = vadd.xlane.f32.xlu2 %v796_v53  ;;  %v895_v54 = vsel %vm197_vm2, %v1511_v51, 0.0 }
 0x636   :  { %896 = vadd.xlane.f32.xlu1 %v895_v54 }
 0x63b   :  { %v915_v55 = vpop.permute.xlu0 %914 }
 0x63c   :  { %935 = vmatpush.msrb.mxu0 %v915_v55 }
 0x63e   :  { %1060 = vmatpush.msra.mxu0 %v1752_v12 }
 0x643   :  { %v965_v19 = vpop.permute.xlu0 %964 }
 0x64d   :  { %966 = vrot.lane.b32.xlu2 %v1769_v35, %s1555_s17 }
 0x64f   :  { %1068 = vrot.lane.b32.xlu1 %v1769_v35, %s1556_s18 }
 0x655   :  { %1066 = vrot.lane.b32.xlu2 %v1794_v52, %s1556_s18 }
 0x6a8   :  { %v798_v56 = vpop.xlane.xlu2 %797 }
 0x6a9   :  { %1512 = vrcp.f32 %v798_v56  ;;  %v897_v57 = vpop.xlane.xlu1 %896  ;;  %v810_v62 = vand.u32 2147483648, %v798_v56  ;;  %v808_v35 = vand.u32 2147483647, %v798_v56  ;;  %vm804_vm6 = vweird.f32 %v798_v56 }
 0x6aa   :  { %1514 = vrcp.f32 %v897_v57  ;;  %v909_v1 = vand.u32 2147483648, %v897_v57  ;;  %v907_v52 = vand.u32 2147483647, %v897_v57  ;;  %vm903_vm8 = vweird.f32 %v897_v57 }
 0x6ab   :  { %v811_v4 = vor.u32 1.1754944e-38, %v810_v62  ;;  %vm809_vm9 = vcmp.eq.f32.partialorder %v808_v35, 8.507059e+37 }
 0x6ac   :  { %v910_v7 = vor.u32 1.1754944e-38, %v909_v1  ;;  %vm908_vm11 = vcmp.eq.f32.partialorder %v907_v52, 8.507059e+37 }
 0x6af   :  { %v1513_v58 = vpop.eup %1512 }
 0x6b0   :  { %v1515_v25 = vpop.eup %1514  ;;  %v800_v59 = vmul.f32 %v1513_v58, %v798_v56  ;;  %v967_v60 = vpop.permute.xlu2 %966  ;;  %vm805_vm4 = vweird.f32 %v1513_v58 }
 0x6b1   :  { %v899_v61 = vmul.f32 %v1515_v25, %v897_v57  ;;  %1465 = vmatpush.xpose.msk.msrb.mxu2 %vm197_vm2, %v967_v60  ;;  %vm904_vm5 = vweird.f32 %v1515_v25  ;;  %vm806_vm7 = vmor %vm804_vm6, %vm805_vm4 }
 0x6b2   :  { %v801_v12 = vsub.f32 1.0, %v800_v59  ;;  %vm905_vm10 = vmor %vm903_vm8, %vm904_vm5 }
 0x6b3   :  { %v900_v63 = vsub.f32 1.0, %v899_v61 }
 0x6b4   :  { %v802_v0 = vmul.f32 %v1513_v58, %v801_v12 }
 0x6b5   :  { %v901_v2 = vmul.f32 %v1515_v25, %v900_v63 }
 0x6b6   :  { %v803_v3 = vadd.f32 %v1513_v58, %v802_v0 }
 0x6b7   :  { %v902_v5 = vadd.f32 %v1515_v25, %v901_v2 }
 0x6b8   :  { %v807_v6 = vsel %vm806_vm7, %v1513_v58, %v803_v3  ;;  %v1067_v20 = vpop.permute.xlu2 %1066 }
 0x6b9   :  { %v812_v34 = vsel %vm809_vm9, %v811_v4, %v807_v6  ;;  %v906_v8 = vsel %vm905_vm10, %v1515_v25, %v902_v5 }
 0x6ba   :  { %v911_v9 = vsel %vm908_vm11, %v910_v7, %v906_v8  ;;  %v813_v13 = vmul.f32 %v1509_v50, %v812_v34  ;;  %v1557_v7 = vmov 32.0  }
 0x6bb   :  { %v912_v15 = vmul.f32 %v1511_v51, %v911_v9 }
 0x6bc   :  { %1459 = vmatmul.msk.f32.vlgmr.msra.gmra.mxu1 %vm197_vm2, %v813_v13 }
 0x6bd   :  { %1463 = vmatmul.msk.f32.vlgmr.msrb.gmra.mxu0 %vm197_vm2, %v912_v15 }
 0x6c1   :  { %v1069_v16 = vpop.permute.xlu1 %1068 }
 0x6c2   :  { %1469 = vmatpush.xpose.msk.msra.mxu1 %vm197_vm2, %v1069_v16 }
 0x739   :  { %v834_v17 = vpop.f32.mrf.mxu1 }
 0x73a   :  { %v937_v18 = vpop.f32.mrf.mxu0  ;;  %1460 = vmatmul.msk.f32.vlgmr.msra.gmra.mxu2 %vm197_vm2, %v834_v17 }
 0x73b   :  { %1464 = vmatmul.msk.f32.vlgmr.msrb.gmra.mxu1 %vm197_vm2, %v937_v18 }
 0x742   :  { %1466 = vmatmul.msk.f32.vlgmr.msrb.gmra.mxu2 %vm197_vm2, %v965_v19 }
 0x743   :  { %1470 = vmatmul.msk.f32.vlgmr.msra.gmra.mxu1 %vm197_vm2, %v1067_v20 }
 0x7b8   :  { %v960_v21 = vpop.f32.mrf.mxu1 }
 0x7bd   :  { %v857_v27 = vpop.f32.mrf.mxu2 }
 0x7be   :  { %v860_v28 = vadd.f32 %v857_v27, %v763_v23 }
 0x7c0   :  { %v1091_v29 = vpop.f32.mrf.mxu1  ;;  %v1856_v36 = vadd.f32 %v960_v21, %v860_v28 }
 0x7c1   :  { %v1094_v38 = vsel %vm197_vm2, %v1091_v29, -inf }
 0x7c2   :  { %1095 = vmax.xlane.f32.xlu0 %v1094_v38 }
 0x7c5   :  { %v989_v39 = vpop.f32.mrf.mxu2 }
 0x7c6   :  { %v992_v40 = vsel %vm197_vm2, %v989_v39, -inf }
 0x7c7   :  { %993 = vmax.xlane.f32.xlu1 %v992_v40 }
 0x7e0   :  { %1118 = vrot.lane.b32.xlu1 %v1778_v42, %s1556_s18 }
 0x835   :  { %v1096_v41 = vpop.xlane.xlu0 %1095 }
 0x836   :  { %v1097_v24 = vsub.f32 %v1091_v29, %v1096_v41 }
 0x838   :  { %v1098_v43 = vmul.f32 1.442695, %v1097_v24 }
 0x83a   :  { %1516 = vpow2.f32 %v1098_v43  ;;  %v994_v33 = vpop.xlane.xlu1 %993 }
 0x83b   :  { %v995_v10 = vsub.f32 %v989_v39, %v994_v33 }
 0x83d   :  { %v996_v11 = vmul.f32 1.442695, %v995_v10 }
 0x83f   :  { %1518 = vpow2.f32 %v996_v11 }
 0x840   :  { %v1517_v44 = vpop.eup %1516 }
 0x841   :  { %v1100_v45 = vsel %vm197_vm2, %v1517_v44, 0.0 }
 0x842   :  { %1101 = vadd.xlane.f32.xlu2 %v1100_v45 }
 0x845   :  { %v1519_v46 = vpop.eup %1518 }
 0x846   :  { %v998_v47 = vsel %vm197_vm2, %v1519_v46, 0.0 }
 0x847   :  { %999 = vadd.xlane.f32.xlu0 %v998_v47 }
 0x84f   :  { %604 = vadd.xlane.f32.xlu0 %v603_v32  ;;  %v1486_v32 = vld [vmem:[%s2020_s3 + $0x6] ss:$0 sm:$0xff] }
 0x852   :  { %v1119_v48 = vpop.permute.xlu1 %1118 }
 0x853   :  { %1139 = vmatpush.msra.mxu2 %v1119_v48 }
 0x85a   :  { %1016 = vrot.lane.b32.xlu2 %v1778_v42, %s1555_s17 }
 0x8b5   :  { %v1102_v49 = vpop.xlane.xlu2 %1101 }
 0x8b6   :  { %1520 = vrcp.f32 %v1102_v49  ;;  %v1114_v56 = vand.u32 2147483648, %v1102_v49  ;;  %v1112_v25 = vand.u32 2147483647, %v1102_v49  ;;  %vm1108_vm14 = vweird.f32 %v1102_v49 }
 0x8b8   :  { %v1115_v42 = vor.u32 1.1754944e-38, %v1114_v56  ;;  %vm1113_vm0 = vcmp.eq.f32.partialorder %v1112_v25, 8.507059e+37 }
 0x8ba   :  { %v1000_v50 = vpop.xlane.xlu0 %999 }
 0x8bb   :  { %1522 = vrcp.f32 %v1000_v50  ;;  %v1012_v62 = vand.u32 2147483648, %v1000_v50  ;;  %v1010_v35 = vand.u32 2147483647, %v1000_v50  ;;  %vm1006_vm3 = vweird.f32 %v1000_v50 }
 0x8bc   :  { %v1521_v51 = vpop.eup %1520  ;;  %1524 = vrcp.f32 %v1557_v7 }
 0x8bd   :  { %v1104_v53 = vmul.f32 %v1521_v51, %v1102_v49  ;;  %v1017_v54 = vpop.permute.xlu2 %1016  ;;  %vm1109_vm13 = vweird.f32 %v1521_v51  ;;  %v1013_v2 = vor.u32 1.1754944e-38, %v1012_v62  ;;  %vm1011_vm5 = vcmp.eq.f32.partialorder %v1010_v35, 8.507059e+37 }
 0x8be   :  { %1037 = vmatpush.msra.mxu3 %v1017_v54  ;;  %vm1110_vm15 = vmor %vm1108_vm14, %vm1109_vm13  ;;  %v1488_v54 = vld [vmem:[%s2020_s3 + $0x8] ss:$0 sm:$0xff] }
 0x8bf   :  { %v1105_v55 = vsub.f32 1.0, %v1104_v53 }
 0x8c0   :  { %1162 = vmatpush.msrb.mxu3 %v1806_v22 }
 0x8c1   :  { %v1523_v57 = vpop.eup %1522  ;;  %v1106_v58 = vmul.f32 %v1521_v51, %v1105_v55 }
 0x8c2   :  { %v1002_v59 = vmul.f32 %v1523_v57, %v1000_v50  ;;  %vm1007_vm1 = vweird.f32 %v1523_v57  ;;  %v1525_v34 = vpop.eup %1524  ;;  %v605_v17 = vpop.xlane.xlu0 %604  ;;  %v1487_v50 = vld [vmem:[%s2020_s3 + $0x7] ss:$0 sm:$0xff] }
 0x8c3   :  { %v1107_v60 = vadd.f32 %v1521_v51, %v1106_v58  ;;  %vm1008_vm4 = vmor %vm1006_vm3, %vm1007_vm1  ;;  %v607_v8 = vmul.f32 32.0, %v1525_v34  ;;  %vm611_vm6 = vweird.f32 %v1525_v34 }
 0x8c4   :  { %v1003_v61 = vsub.f32 1.0, %v1002_v59 }
 0x8c5   :  { %v1111_v12 = vsel %vm1110_vm15, %v1521_v51, %v1107_v60  ;;  %v608_v9 = vsub.f32 1.0, %v607_v8 }
 0x8c6   :  { %v1116_v63 = vsel %vm1113_vm0, %v1115_v42, %v1111_v12  ;;  %v1004_v0 = vmul.f32 %v1523_v57, %v1003_v61 }
 0x8c7   :  { %v1117_v1 = vmul.f32 %v1517_v44, %v1116_v63  ;;  %v609_v13 = vmul.f32 %v1525_v34, %v608_v9 }
 0x8c8   :  { %v1005_v22 = vadd.f32 %v1523_v57, %v1004_v0 }
 0x8c9   :  { %1471 = vmatmul.msk.f32.vlgmr.msra.gmra.mxu2 %vm197_vm2, %v1117_v1  ;;  %v610_v15 = vadd.f32 %v1525_v34, %v609_v13 }
 0x8ca   :  { %v1009_v52 = vsel %vm1008_vm4, %v1523_v57, %v1005_v22 }
 0x8cb   :  { %v1014_v3 = vsel %vm1011_vm5, %v1013_v2, %v1009_v52  ;;  %v612_v16 = vsel %vm611_vm6, %v1525_v34, %v610_v15  ;;  %v679_v52 = vmul.f32 %v1488_v54, %v1818_v30  ;;  %vm1318_vm6 = vcmask 1040384  }
 0x8cc   :  { %v1015_v4 = vmul.f32 %v1519_v46, %v1014_v3  ;;  %v613_v19 = vmul.f32 %v612_v16, %v605_v17 }
 0x8cd   :  { %v680_v3 = vsel %vm602_vm12, %v679_v52, 0.0 }
 0x8ce   :  { %1467 = vmatmul.msk.f32.vlgmr.msra.gmra.mxu3 %vm197_vm2, %v1015_v4  ;;  %v614_v27 = vsub.f32 %v1829_v37, %v613_v19  ;;  %v1480_v4 = vld [vmem:[%s2020_s3 + $0x1] ss:$0 sm:$0xff] }
 0x8cf   :  { %v1907_v8 = vadd.f32 %v1480_v4, %v1686_v31 }
 0x8d0   :  { %v615_v29 = vmul.f32 %v614_v27, %v614_v27 }
 0x8d1   :  { %v1276_v13 = vmul.f32 %v1488_v54, %v1907_v8 }
 0x8d2   :  { %v616_v38 = vsel %vm602_vm12, %v615_v29, 0.0 }
 0x8d3   :  { %v1277_v15 = vsel %vm602_vm12, %v1276_v13, 0.0 }
 0x94c   :  { %v1141_v5 = vpop.f32.mrf.mxu2 }
 0x94d   :  { %1472 = vmatmul.msk.f32.vlgmr.msrb.gmra.mxu3 %vm197_vm2, %v1141_v5  ;;  %v1234_v5 = vmul.f32 %v1488_v54, %v1756_v14 }
 0x94f   :  { %v1235_v7 = vsel %vm602_vm12, %v1234_v5, 0.0 }
 0x951   :  { %v1039_v6 = vpop.f32.mrf.mxu3 }
 0x952   :  { %1468 = vmatmul.msk.f32.vlgmr.msra.gmra.mxu0 %vm197_vm2, %v1039_v6  ;;  %v1902_v6 = vadd.f32 %v1480_v4, %v1675_v26 }
 0x954   :  { %v721_v34 = vmul.f32 %v1488_v54, %v1902_v6 }
 0x956   :  { %v722_v9 = vsel %vm602_vm12, %v721_v34, 0.0 }
 0x9cf   :  { %v1062_v18 = vpop.f32.mrf.mxu0 }
 0x9d0   :  { %v1065_v20 = vadd.f32 %v1062_v18, %v1856_v36  ;;  %v1164_v21 = vpop.f32.mrf.mxu3 }
 0x9d2   :  { %v1167_v23 = vadd.f32 %v1164_v21, %v1065_v20 }
 0x9d4   :  { %v1168_v28 = vsel %vm602_vm12, %v1167_v23, 0.0 }
 0x9d5   :  { %1169 = vadd.xlane.f32.xlu0 %v1168_v28 }
 0x9dd   :  { %617 = vadd.xlane.f32.xlu0 %v616_v38 }
 0xa48   :  { %v1170_v39 = vpop.xlane.xlu0 %1169 }
 0xa49   :  { %v1171_v40 = vmul.f32 %v1170_v39, %v612_v16 }
 0xa4b   :  { %v1172_v41 = vsub.f32 %v1167_v23, %v1171_v40 }
 0xa4d   :  { %v1173_v24 = vmul.f32 %v1172_v41, %v1172_v41 }
 0xa4f   :  { %v1174_v43 = vsel %vm602_vm12, %v1173_v24, 0.0 }
 0xa50   :  { %1175 = vadd.xlane.f32.xlu1 %v1174_v43  ;;  %v618_v33 = vpop.xlane.xlu0 %617 }
 0xa51   :  { %v619_v36 = vmul.f32 %v618_v33, %v612_v16 }
 0xa53   :  { %v620_v10 = vadd.f32 1e-05, %v619_v36 }
 0xa55   :  { %1526 = vrsqrt.f32 %v620_v10  ;;  %vm627_vm7 = vweird.f32 %v620_v10 }
 0xa5b   :  { %v1527_v11 = vpop.eup %1526 }
 0xa5c   :  { %v622_v37 = vmul.f32 %v1527_v11, %v620_v10  ;;  %vm628_vm2 = vweird.f32 %v1527_v11 }
 0xa5d   :  { %vm629_vm8 = vmor %vm627_vm7, %vm628_vm2 }
 0xa5e   :  { %v623_v44 = vmul.f32 %v1527_v11, %v622_v37 }
 0xa60   :  { %v624_v45 = vmul.f32 0.5, %v623_v44 }
 0xa62   :  { %v625_v46 = vsub.f32 1.5, %v624_v45 }
 0xa64   :  { %v626_v47 = vmul.f32 %v1527_v11, %v625_v46 }
 0xa66   :  { %v630_v48 = vsel %vm629_vm8, %v1527_v11, %v626_v47 }
 0xa67   :  { %v631_v49 = vmul.f32 %v630_v48, %v614_v27 }
 0xa69   :  { %v633_v51 = vmul.f32 %v1486_v32, %v631_v49 }
 0xa6b   :  { %v1884_v53 = vadd.f32 %v1487_v50, %v633_v51 }
 0xa6d   :  { %v637_v55 = vmul.f32 %v1488_v54, %v1884_v53 }
 0xa6f   :  { %v638_v56 = vsel %vm602_vm12, %v637_v55, 0.0 }
 0xa70   :  { %639 = vadd.xlane.f32.xlu2 %v638_v56 }
 0xac3   :  { %v1176_v57 = vpop.xlane.xlu1 %1175 }
 0xac4   :  { %v1177_v58 = vmul.f32 %v1176_v57, %v612_v16 }
 0xac6   :  { %v1178_v25 = vadd.f32 1e-05, %v1177_v58 }
 0xac8   :  { %1528 = vrsqrt.f32 %v1178_v25  ;;  %vm1185_vm10 = vweird.f32 %v1178_v25 }
 0xace   :  { %v1529_v59 = vpop.eup %1528 }
 0xacf   :  { %v1180_v60 = vmul.f32 %v1529_v59, %v1178_v25  ;;  %vm1186_vm9 = vweird.f32 %v1529_v59 }
 0xad0   :  { %vm1187_vm11 = vmor %vm1185_vm10, %vm1186_vm9 }
 0xad1   :  { %v1181_v42 = vmul.f32 %v1529_v59, %v1180_v60 }
 0xad3   :  { %v1182_v61 = vmul.f32 0.5, %v1181_v42  ;;  %v1323_v42 = vld [vmem:[%s2018_s2 + $0x110] sm:$0xff] }
 0xad4   :  { %1341 = vmatpush.msrb.mxu0 %v1323_v42 }
 0xad5   :  { %v1183_v12 = vsub.f32 1.5, %v1182_v61 }
 0xad7   :  { %v1184_v62 = vmul.f32 %v1529_v59, %v1183_v12  ;;  %v1322_v12 = vld [vmem:[%s2018_s2 + $0x108] sm:$0xff] }
 0xad8   :  { %1342 = vmatpush.msrb.mxu0 %v1322_v12 }
 0xad9   :  { %v1188_v63 = vsel %vm1187_vm11, %v1529_v59, %v1184_v62 }
 0xada   :  { %v1189_v0 = vmul.f32 %v1188_v63, %v1172_v41  ;;  %v1321_v63 = vld [vmem:[%s2018_s2 + $0x100] sm:$0xff] }
 0xadb   :  { %1343 = vmatpush.msrb.mxu0 %v1321_v63 }
 0xadc   :  { %v1190_v35 = vmul.f32 %v1486_v32, %v1189_v0 }
 0xade   :  { %v1891_v1 = vadd.f32 %v1487_v50, %v1190_v35  ;;  %v1320_v35 = vld [vmem:[%s2018_s2 + $0xf8] sm:$0xff] }
 0xadf   :  { %1344 = vmatpush.msrb.mxu0 %v1320_v35 }
 0xae0   :  { %v1192_v22 = vmul.f32 %v1488_v54, %v1891_v1 }
 0xae2   :  { %v1193_v2 = vsel %vm602_vm12, %v1192_v22, 0.0 }
 0xae3   :  { %1194 = vadd.xlane.f32.xlu0 %v1193_v2  ;;  %v640_v16 = vpop.xlane.xlu2 %639 }
 0xae4   :  { %v641_v17 = vrot.slane %v640_v16, 4 }
 0xae6   :  { %v642_v26 = vmax.f32 %v640_v16, %v641_v17 }
 0xae8   :  { %v643_v18 = vrot.slane %v642_v26, 2 }
 0xaea   :  { %v644_v19 = vmax.f32 %v642_v26, %v643_v18 }
 0xaeb   :  { %681 = vadd.xlane.f32.xlu0 %v680_v3 }
 0xaec   :  { %v645_v20 = vrot.slane %v644_v19, 1 }
 0xaee   :  { %v646_v21 = vmax.f32 %v644_v19, %v645_v20 }
 0xaf0   :  { %v647_v23 = vsub.f32 %v640_v16, %v646_v21 }
 0xaf2   :  { %v648_v27 = vmul.f32 1.442695, %v647_v23 }
 0xaf3   :  { %1236 = vadd.xlane.f32.xlu0 %v1235_v7 }
 0xaf4   :  { %1530 = vpow2.f32 %v648_v27 }
 0xafa   :  { %v1531_v31 = vpop.eup %1530 }
 0xafb   :  { %723 = vadd.xlane.f32.xlu0 %v722_v9  ;;  %v650_v28 = vrot.slane %v1531_v31, 4 }
 0xafd   :  { %v651_v29 = vadd.f32 %v1531_v31, %v650_v28 }
 0xaff   :  { %v652_v38 = vrot.slane %v651_v29, 2 }
 0xb01   :  { %v653_v39 = vadd.f32 %v652_v38, %v651_v29 }
 0xb03   :  { %1278 = vadd.xlane.f32.xlu0 %v1277_v15  ;;  %v654_v41 = vrot.slane %v653_v39, 1 }
 0xb05   :  { %v655_v33 = vadd.f32 %v654_v41, %v653_v39 }
 0xb07   :  { %1532 = vrcp.f32 %v655_v33  ;;  %v667_v57 = vand.u32 2147483648, %v655_v33  ;;  %vm661_vm14 = vweird.f32 %v655_v33  ;;  %v665_v58 = vand.u32 2147483647, %v655_v33 }
 0xb09   :  { %v668_v61 = vor.u32 1.1754944e-38, %v667_v57  ;;  %vm666_vm0 = vcmp.eq.f32.partialorder %v665_v58, 8.507059e+37 }
 0xb0d   :  { %v1533_v45 = vpop.eup %1532 }
 0xb0e   :  { %v657_v47 = vmul.f32 %v1533_v45, %v655_v33  ;;  %vm662_vm13 = vweird.f32 %v1533_v45  ;;  %v1352_v33 = vld [vmem:[%s2018_s2 + $0x118] sm:$0xff] }
 0xb0f   :  { %vm663_vm15 = vmor %vm661_vm14, %vm662_vm13 }
 0xb10   :  { %v658_v32 = vsub.f32 1.0, %v657_v47  ;;  %v1385_v47 = vld [vmem:[%s2018_s2 + $0x140] sm:$0xff] }
 0xb12   :  { %v659_v50 = vmul.f32 %v1533_v45, %v658_v32 }
 0xb14   :  { %v660_v55 = vadd.f32 %v1533_v45, %v659_v50 }
 0xb16   :  { %v664_v59 = vsel %vm663_vm15, %v1533_v45, %v660_v55 }
 0xb17   :  { %v669_v62 = vsel %vm666_vm0, %v668_v61, %v664_v59 }
 0xb18   :  { %v670_v0 = vmul.f32 %v1531_v31, %v669_v62 }
 0xb1a   :  { %v671_v52 = vmul.f32 %v670_v0, %v1884_v53 }
 0xb1c   :  { %v672_v34 = vsel %vm602_vm12, %v671_v52, 0.0 }
 0xb1d   :  { %v673_v15 = vrot.slane %v672_v34, 4 }
 0xb1f   :  { %v674_v18 = vadd.f32 %v673_v15, %v672_v34 }
 0xb21   :  { %v675_v20 = vrot.slane %v674_v18, 2 }
 0xb23   :  { %v676_v27 = vadd.f32 %v675_v20, %v674_v18 }
 0xb25   :  { %v677_v29 = vrot.slane %v676_v27, 1 }
 0xb27   :  { %v678_v39 = vadd.f32 %v677_v29, %v676_v27 }
 0xb56   :  { %v1195_v40 = vpop.xlane.xlu0 %1194 }
 0xb57   :  { %v1196_v24 = vrot.slane %v1195_v40, 4 }
 0xb59   :  { %v1197_v43 = vmax.f32 %v1195_v40, %v1196_v24  ;;  %v1355_v24 = vld [vmem:[%s2018_s2 + $0x130] sm:$0xff] }
 0xb5a   :  { %1373 = vmatpush.msrb.mxu1 %v1355_v24 }
 0xb5b   :  { %v1198_v36 = vrot.slane %v1197_v43, 2 }
 0xb5d   :  { %v1199_v10 = vmax.f32 %v1197_v43, %v1198_v36  ;;  %v1353_v43 = vld [vmem:[%s2018_s2 + $0x120] sm:$0xff]  ;;  %v1387_v36 = vld [vmem:[%s2018_s2 + $0x150] sm:$0xff] }
 0xb5e   :  { %1405 = vmatpush.msrb.mxu2 %v1387_v36  ;;  %v682_v32 = vpop.xlane.xlu0 %681 }
 0xb5f   :  { %v1200_v11 = vrot.slane %v1199_v10, 1 }
 0xb61   :  { %v1201_v37 = vmax.f32 %v1199_v10, %v1200_v11  ;;  %v1489_v10 = vld [vmem:[%s2020_s3 + $0x9] ss:$0 sm:$0xff] }
 0xb63   :  { %v1202_v44 = vsub.f32 %v1195_v40, %v1201_v37 }
 0xb65   :  { %v1203_v46 = vmul.f32 1.442695, %v1202_v44 }
 0xb67   :  { %1534 = vpow2.f32 %v1203_v46  ;;  %v1386_v46 = vld [vmem:[%s2018_s2 + $0x148] sm:$0xff] }
 0xb68   :  { %1406 = vmatpush.msrb.mxu2 %v1386_v46 }
 0xb6a   :  { %1407 = vmatpush.msrb.mxu2 %v1385_v47 }
 0xb6d   :  { %v1535_v48 = vpop.eup %1534 }
 0xb6e   :  { %v1205_v49 = vrot.slane %v1535_v48, 4 }
 0xb70   :  { %v1206_v51 = vadd.f32 %v1535_v48, %v1205_v49  ;;  %v1237_v49 = vpop.xlane.xlu0 %1236 }
 0xb71   :  { %v1238_v58 = vrot.slane %v1237_v49, 4 }
 0xb72   :  { %v1207_v54 = vrot.slane %v1206_v51, 2 }
 0xb73   :  { %v1239_v61 = vmax.f32 %v1237_v49, %v1238_v58 }
 0xb74   :  { %v1208_v56 = vadd.f32 %v1207_v54, %v1206_v51  ;;  %v1490_v51 = vld [vmem:[%s2020_s3 + $0xa] ss:$0 sm:$0xff] }
 0xb75   :  { %v1240_v0 = vrot.slane %v1239_v61, 2 }
 0xb76   :  { %v1209_v25 = vrot.slane %v1208_v56, 1 }
 0xb77   :  { %v1241_v52 = vmax.f32 %v1239_v61, %v1240_v0 }
 0xb78   :  { %v1210_v60 = vadd.f32 %v1209_v25, %v1208_v56  ;;  %v724_v50 = vpop.xlane.xlu0 %723 }
 0xb79   :  { %v725_v42 = vrot.slane %v724_v50, 4 }
 0xb7a   :  { %1536 = vrcp.f32 %v1210_v60  ;;  %v1222_v4 = vand.u32 2147483648, %v1210_v60  ;;  %v1220_v7 = vand.u32 2147483647, %v1210_v60  ;;  %vm1216_vm3 = vweird.f32 %v1210_v60 }
 0xb7b   :  { %v726_v63 = vmax.f32 %v724_v50, %v725_v42 }
 0xb7c   :  { %v1223_v13 = vor.u32 1.1754944e-38, %v1222_v4  ;;  %vm1221_vm5 = vcmp.eq.f32.partialorder %v1220_v7, 8.507059e+37  ;;  %v1242_v7 = vrot.slane %v1241_v52, 1 }
 0xb7e   :  { %v1243_v15 = vmax.f32 %v1241_v52, %v1242_v7 }
 0xb80   :  { %v1537_v22 = vpop.eup %1536  ;;  %v1279_v56 = vpop.xlane.xlu0 %1278  ;;  %v1244_v18 = vsub.f32 %v1237_v49, %v1243_v15 }
 0xb81   :  { %v1212_v2 = vmul.f32 %v1537_v22, %v1210_v60  ;;  %vm1217_vm1 = vweird.f32 %v1537_v22  ;;  %v1280_v25 = vrot.slane %v1279_v56, 4  ;;  %v683_v60 = vrot.slane %v682_v32, 4 }
 0xb82   :  { %vm1218_vm4 = vmor %vm1216_vm3, %vm1217_vm1 }
 0xb83   :  { %v1213_v3 = vsub.f32 1.0, %v1212_v2  ;;  %v1281_v12 = vmax.f32 %v1279_v56, %v1280_v25  ;;  %v684_v62 = vmax.f32 %v682_v32, %v683_v60  ;;  %v727_v2 = vrot.slane %v726_v63, 2 }
 0xb85   :  { %v1214_v5 = vmul.f32 %v1537_v22, %v1213_v3  ;;  %v1282_v35 = vrot.slane %v1281_v12, 2 }
 0xb87   :  { %v1215_v9 = vadd.f32 %v1537_v22, %v1214_v5  ;;  %v1283_v3 = vmax.f32 %v1281_v12, %v1282_v35  ;;  %v728_v5 = vmax.f32 %v726_v63, %v727_v2 }
 0xb89   :  { %v1219_v16 = vsel %vm1218_vm4, %v1537_v22, %v1215_v9  ;;  %v685_v22 = vrot.slane %v684_v62, 2  ;;  %v1284_v34 = vrot.slane %v1283_v3, 1 }
 0xb8a   :  { %v1224_v17 = vsel %vm1221_vm5, %v1223_v13, %v1219_v16  ;;  %v729_v13 = vrot.slane %v728_v5, 1 }
 0xb8b   :  { %v1225_v26 = vmul.f32 %v1535_v48, %v1224_v17  ;;  %v1384_v48 = vld [vmem:[%s2018_s2 + $0x138] sm:$0xff]  ;;  %v686_v4 = vmax.f32 %v684_v62, %v685_v22  ;;  %v1285_v16 = vmax.f32 %v1283_v3, %v1284_v34 }
 0xb8c   :  { %1408 = vmatpush.msrb.mxu2 %v1384_v48 }
 0xb8d   :  { %v1226_v19 = vmul.f32 %v1225_v26, %v1891_v1  ;;  %v1354_v1 = vld [vmem:[%s2018_s2 + $0x128] sm:$0xff]  ;;  %v687_v9 = vrot.slane %v686_v4, 1  ;;  %v730_v26 = vmax.f32 %v728_v5, %v729_v13 }
 0xb8e   :  { %1374 = vmatpush.msrb.mxu1 %v1354_v1 }
 0xb8f   :  { %v1227_v53 = vsel %vm602_vm12, %v1226_v19, 0.0  ;;  %v688_v17 = vmax.f32 %v686_v4, %v687_v9  ;;  %v1286_v19 = vsub.f32 %v1279_v56, %v1285_v16  ;;  %v731_v20 = vsub.f32 %v724_v50, %v730_v26 }
 0xb90   :  { %v1228_v21 = vrot.slane %v1227_v53, 4  ;;  %1375 = vmatpush.msrb.mxu1 %v1353_v43 }
 0xb92   :  { %v1229_v23 = vadd.f32 %v1228_v21, %v1227_v53  ;;  %1376 = vmatpush.msrb.mxu1 %v1352_v33  ;;  %v689_v53 = vsub.f32 %v682_v32, %v688_v17  ;;  %v1245_v21 = vmul.f32 1.442695, %v1244_v18 }
 0xb94   :  { %v1230_v31 = vrot.slane %v1229_v23, 2  ;;  %v690_v27 = vmul.f32 1.442695, %v689_v53  ;;  %1538 = vpow2.f32 %v1245_v21 }
 0xb96   :  { %v1231_v28 = vadd.f32 %v1230_v31, %v1229_v23  ;;  %v1287_v23 = vmul.f32 1.442695, %v1286_v19  ;;  %v732_v31 = vmul.f32 1.442695, %v731_v20 }
 0xb98   :  { %v1232_v38 = vrot.slane %v1231_v28, 1  ;;  %1540 = vpow2.f32 %v1287_v23 }
 0xb99   :  { %1542 = vpow2.f32 %v690_v27 }
 0xb9a   :  { %v1233_v40 = vadd.f32 %v1232_v38, %v1231_v28  ;;  %1544 = vpow2.f32 %v732_v31  ;;  %v1962_v28 = vpop.eup %1538 }
 0xb9c   :  { %v1319_v41 = vsel %vm1318_vm6, %v678_v39, %v1233_v40  ;;  %v1247_v40 = vrot.slane %v1962_v28, 4 }
 0xb9d   :  { %1473 = vmatmul.msk.f32.vlgmr.msrb.gmra.mxu0 %vm602_vm12, %v1319_v41 }
 0xb9e   :  { %v1964_v29 = vpop.eup %1540  ;;  %v1248_v43 = vadd.f32 %v1962_v28, %v1247_v40 }
 0xb9f   :  { %v1966_v38 = vpop.eup %1542  ;;  %v1289_v41 = vrot.slane %v1964_v29, 4 }
 0xba0   :  { %v1968_v39 = vpop.eup %1544  ;;  %v692_v24 = vrot.slane %v1966_v38, 4 }
 0xba1   :  { %v734_v1 = vrot.slane %v1968_v39, 4  ;;  %v1290_v33 = vadd.f32 %v1964_v29, %v1289_v41 }
 0xba2   :  { %v693_v36 = vadd.f32 %v1966_v38, %v692_v24 }
 0xc1a   :  { %v1346_v11 = vpop.f32.mrf.mxu0 }
 0xc1b   :  { %v1347_v37 = vadd.f32 %v1489_v10, %v1346_v11  ;;  %v735_v10 = vadd.f32 %v1968_v39, %v734_v1  ;;  %v1249_v11 = vrot.slane %v1248_v43, 2 }
 0xc1d   :  { %vm1349_vm2 = vcmp.gt.f32.partialorder %v1347_v37, 0.0  ;;  %v1350_v44 = vmul.f32 0.01, %v1347_v37  ;;  %v1250_v46 = vadd.f32 %v1249_v11, %v1248_v43 }
 0xc1f   :  { %v1351_v45 = vsel %vm1349_vm2, %v1347_v37, %v1350_v44  ;;  %v1291_v37 = vrot.slane %v1290_v33, 2  ;;  %v694_v44 = vrot.slane %v693_v36, 2  ;;  %v1251_v49 = vrot.slane %v1250_v46, 1 }
 0xc20   :  { %1474 = vmatmul.msk.f32.vlgmr.msrb.gmra.mxu1 %vm602_vm12, %v1351_v45  ;;  %v736_v45 = vrot.slane %v735_v10, 2 }
 0xc21   :  { %v1292_v47 = vadd.f32 %v1291_v37, %v1290_v33  ;;  %v695_v32 = vadd.f32 %v694_v44, %v693_v36 }
 0xc22   :  { %v737_v48 = vadd.f32 %v736_v45, %v735_v10 }
 0xc23   :  { %v1293_v50 = vrot.slane %v1292_v47, 1 }
 0xc25   :  { %v1294_v56 = vadd.f32 %v1293_v50, %v1292_v47 }
 0xc27   :  { %v1306_v17 = vand.u32 2147483648, %v1294_v56  ;;  %vm1300_vm15 = vweird.f32 %v1294_v56  ;;  %v1304_v19 = vand.u32 2147483647, %v1294_v56 }
 0xc29   :  { %v1307_v1 = vor.u32 1.1754944e-38, %v1306_v17 }
 0xc9d   :  { %v1378_v54 = vpop.f32.mrf.mxu1 }
 0xc9e   :  { %v1379_v55 = vadd.f32 %v1490_v51, %v1378_v54  ;;  %v696_v51 = vrot.slane %v695_v32, 1  ;;  %v738_v54 = vrot.slane %v737_v48, 1 }
 0xca0   :  { %vm1381_vm7 = vcmp.gt.f32.partialorder %v1379_v55, 0.0  ;;  %v1382_v57 = vmul.f32 0.01, %v1379_v55  ;;  %v739_v58 = vadd.f32 %v738_v54, %v737_v48 }
 0xca2   :  { %v1383_v59 = vsel %vm1381_vm7, %v1379_v55, %v1382_v57  ;;  %v1252_v55 = vadd.f32 %v1251_v49, %v1250_v46  ;;  %v697_v57 = vadd.f32 %v696_v51, %v695_v32  ;;  %v751_v21 = vand.u32 2147483648, %v739_v58 }
 0xca3   :  { %1475 = vmatmul.msk.f32.vlgmr.msrb.gmra.mxu2 %vm602_vm12, %v1383_v59  ;;  %vm745_vm4 = vweird.f32 %v739_v58  ;;  %v749_v40 = vand.u32 2147483647, %v739_v58  ;;  %vm1305_vm7 = vcmp.eq.f32.partialorder %v1304_v19, 8.507059e+37 }
 0xca4   :  { %1546 = vrcp.f32 %v1252_v55  ;;  %v709_v7 = vand.u32 2147483648, %v697_v57  ;;  %v1264_v9 = vand.u32 2147483648, %v1252_v55  ;;  %vm1258_vm11 = vweird.f32 %v1252_v55 }
 0xca5   :  { %1548 = vrcp.f32 %v1294_v56  ;;  %v1262_v16 = vand.u32 2147483647, %v1252_v55  ;;  %vm703_vm0 = vweird.f32 %v697_v57  ;;  %v707_v53 = vand.u32 2147483647, %v697_v57 }
 0xca6   :  { %1550 = vrcp.f32 %v697_v57  ;;  %v1265_v31 = vor.u32 1.1754944e-38, %v1264_v9  ;;  %v710_v43 = vor.u32 1.1754944e-38, %v709_v7  ;;  %v752_v10 = vor.u32 1.1754944e-38, %v751_v21 }
 0xca7   :  { %1552 = vrcp.f32 %v739_v58  ;;  %vm1263_vm5 = vcmp.eq.f32.partialorder %v1262_v16, 8.507059e+37 }
 0xcaa   :  { %v1547_v25 = vpop.eup %1546 }
 0xcab   :  { %v1549_v59 = vpop.eup %1548  ;;  %v1254_v61 = vmul.f32 %v1547_v25, %v1252_v55  ;;  %vm1259_vm8 = vweird.f32 %v1547_v25 }
 0xcac   :  { %v1551_v60 = vpop.eup %1550  ;;  %v1296_v12 = vmul.f32 %v1549_v59, %v1294_v56  ;;  %vm1301_vm10 = vweird.f32 %v1549_v59  ;;  %vm1978_vm13 = vmor %vm1258_vm11, %vm1259_vm8  ;;  %vm708_vm8 = vcmp.eq.f32.partialorder %v707_v53, 8.507059e+37  ;;  %vm1425_vm11 = vcmask 259072  }
 0xcad   :  { %v1553_v42 = vpop.eup %1552  ;;  %v699_v62 = vmul.f32 %v1551_v60, %v697_v57  ;;  %v1255_v0 = vsub.f32 1.0, %v1254_v61  ;;  %vm704_vm9 = vweird.f32 %v1551_v60  ;;  %vm1984_vm1 = vmor %vm1300_vm15, %vm1301_vm10  ;;  %vm1423_vm10 = vcmask 1043456  }
 0xcae   :  { %v741_v63 = vmul.f32 %v1553_v42, %v739_v58  ;;  %v1297_v35 = vsub.f32 1.0, %v1296_v12  ;;  %vm746_vm14 = vweird.f32 %v1553_v42  ;;  %vm1989_vm3 = vmor %vm703_vm0, %vm704_vm9  ;;  %vm750_vm9 = vcmp.eq.f32.partialorder %v749_v40, 8.507059e+37 }
 0xcaf   :  { %v700_v22 = vsub.f32 1.0, %v699_v62  ;;  %v1256_v52 = vmul.f32 %v1547_v25, %v1255_v0  ;;  %vm747_vm2 = vmor %vm745_vm4, %vm746_vm14 }
 0xcb0   :  { %v742_v2 = vsub.f32 1.0, %v741_v63  ;;  %v1298_v3 = vmul.f32 %v1549_v59, %v1297_v35 }
 0xcb1   :  { %v701_v4 = vmul.f32 %v1551_v60, %v700_v22  ;;  %v1257_v34 = vadd.f32 %v1547_v25, %v1256_v52 }
 0xcb2   :  { %v743_v5 = vmul.f32 %v1553_v42, %v742_v2  ;;  %v1299_v13 = vadd.f32 %v1549_v59, %v1298_v3 }
 0xcb3   :  { %v702_v15 = vadd.f32 %v1551_v60, %v701_v4  ;;  %v1261_v20 = vsel %vm1978_vm13, %v1547_v25, %v1257_v34 }
 0xcb4   :  { %v744_v18 = vadd.f32 %v1553_v42, %v743_v5  ;;  %v1303_v41 = vsel %vm1984_vm1, %v1549_v59, %v1299_v13  ;;  %v1266_v33 = vsel %vm1263_vm5, %v1265_v31, %v1261_v20  ;;  %v1491_v5 = vld [vmem:[%s2020_s3 + $0xb] ss:$0 sm:$0xff] }
 0xcb5   :  { %v706_v24 = vsel %vm1989_vm3, %v1551_v60, %v702_v15  ;;  %v1308_v11 = vsel %vm1305_vm7, %v1307_v1, %v1303_v41  ;;  %v1267_v44 = vmul.f32 %v1962_v28, %v1266_v33 }
 0xcb6   :  { %v748_v36 = vsel %vm747_vm2, %v1553_v42, %v744_v18  ;;  %v711_v37 = vsel %vm708_vm8, %v710_v43, %v706_v24  ;;  %v1309_v46 = vmul.f32 %v1964_v29, %v1308_v11 }
 0xcb7   :  { %v753_v45 = vsel %vm750_vm9, %v752_v10, %v748_v36  ;;  %v712_v47 = vmul.f32 %v1966_v38, %v711_v37  ;;  %v1268_v48 = vmul.f32 %v1267_v44, %v1756_v14 }
 0xcb8   :  { %v754_v32 = vmul.f32 %v1968_v39, %v753_v45  ;;  %v1310_v49 = vmul.f32 %v1309_v46, %v1907_v8 }
 0xcb9   :  { %v713_v50 = vmul.f32 %v712_v47, %v1818_v30  ;;  %v1269_v54 = vsel %vm602_vm12, %v1268_v48, 0.0 }
 0xcba   :  { %v755_v51 = vmul.f32 %v754_v32, %v1902_v6  ;;  %v1311_v55 = vsel %vm602_vm12, %v1310_v49, 0.0  ;;  %v1270_v56 = vrot.slane %v1269_v54, 4 }
 0xcbb   :  { %v714_v28 = vsel %vm602_vm12, %v713_v50, 0.0  ;;  %v1312_v38 = vrot.slane %v1311_v55, 4 }
 0xcbc   :  { %v756_v29 = vsel %vm602_vm12, %v755_v51, 0.0  ;;  %v715_v57 = vrot.slane %v714_v28, 4  ;;  %v1271_v58 = vadd.f32 %v1270_v56, %v1269_v54  ;;  %vm1421_vm12 = vcmask 1041408  }
 0xcbd   :  { %v757_v39 = vrot.slane %v756_v29, 4  ;;  %v1313_v14 = vadd.f32 %v1312_v38, %v1311_v55 }
 0xcbe   :  { %v716_v25 = vadd.f32 %v715_v57, %v714_v28  ;;  %v1272_v59 = vrot.slane %v1271_v58, 2 }
 0xcbf   :  { %v758_v8 = vadd.f32 %v757_v39, %v756_v29  ;;  %v1314_v30 = vrot.slane %v1313_v14, 2 }
 0xcc0   :  { %v717_v60 = vrot.slane %v716_v25, 2  ;;  %v1273_v42 = vadd.f32 %v1272_v59, %v1271_v58 }
 0xcc1   :  { %v759_v6 = vrot.slane %v758_v8, 2  ;;  %v1315_v61 = vadd.f32 %v1314_v30, %v1313_v14 }
 0xcc2   :  { %v718_v12 = vadd.f32 %v717_v60, %v716_v25  ;;  %v1274_v63 = vrot.slane %v1273_v42, 1 }
 0xcc3   :  { %v760_v62 = vadd.f32 %v759_v6, %v758_v8  ;;  %v1316_v0 = vrot.slane %v1315_v61, 1 }
 0xcc4   :  { %v719_v35 = vrot.slane %v718_v12, 1  ;;  %v1275_v2 = vadd.f32 %v1274_v63, %v1273_v42 }
 0xcc5   :  { %v761_v22 = vrot.slane %v760_v62, 1  ;;  %v1317_v52 = vadd.f32 %v1316_v0, %v1315_v61 }
 0xcc6   :  { %v720_v3 = vadd.f32 %v719_v35, %v718_v12 }
 0xcc7   :  { %v762_v4 = vadd.f32 %v761_v22, %v760_v62 }
 0xcc8   :  { %v1413_v7 = vsel %vm1318_vm6, %v720_v3, %v1275_v2 }
 0xcc9   :  { %v1414_v34 = vsel %vm1318_vm6, %v762_v4, %v1317_v52  ;;  %v1416_v15 = vrot.slane %v1413_v7, 6 }
 0xcca   :  { %v1419_v16 = vrot.slane %v1414_v34, 4 }
 0xd26   :  { %v1410_v9 = vpop.f32.mrf.mxu2 }
 0xd27   :  { %v1411_v13 = vadd.f32 %v1491_v5, %v1410_v9 }
 0xd29   :  { %v1422_v17 = vsel %vm1421_vm12, %v1411_v13, %v1416_v15 }
 0xd2a   :  { %v1424_v26 = vsel %vm1423_vm10, %v1422_v17, %v1419_v16 }
 0xd2b   :  { %1426 = vst.msk [vmem:[%s2022_s4] sm:$0x3f] %vm1425_vm11, %v1424_v26 }

</bundles_post_ra>
